<compile_context>
chip_gen: v5e
topology: v5e:2x2
jax: 0.10.0
libtpu: 0.0.40
codegen_flags: <defaults>
</compile_context>

<pallas_src>
import math
import functools

import jax
import jax.numpy as jnp
from jax import lax
from jax.experimental import pallas as pl
from jax.experimental.pallas import tpu as pltpu


# ---------------------------------------------------------------------------
# In-kernel building blocks  (activations: (C, P) with P = H*W on lanes)
# ---------------------------------------------------------------------------
def _pw(x, w, b, mxu_dtype):
    """1x1 conv (+ folded BN): (Cout,Cin) @ (Cin,P) on the MXU, f32 accumulate."""
    y = jnp.dot(w.astype(mxu_dtype), x.astype(mxu_dtype),
                preferred_element_type=jnp.float32)
    return y + b


def _dw3x3(x, w, b, masks, W, P):
    """3x3 depthwise conv, stride 1, SAME padding (+ folded BN).

    x: (C, P), w: (C, 9) taps row-major over (kh, kw), b: (C, 1).
    Column/row shifts are pltpu.roll lane rotations (XLU); edges are zeroed with
    precomputed iota masks. Only 4 rolls + 4 selects per call.
    """
    m_left, m_right, m_top, m_bot = masks

    def tap(j):
        return w[:, j:j + 1]                       # (C, 1), broadcast over lanes

    x_w = jnp.where(m_left, pltpu.roll(x, shift=1, axis=1), 0.0)       # x[h, w-1]
    x_e = jnp.where(m_right, pltpu.roll(x, shift=P - 1, axis=1), 0.0)  # x[h, w+1]

    # center row (kh = 1)
    acc = x_w * tap(3) + x * tap(4) + x_e * tap(5)
    # north row (kh = 0): combine taps first, then one row roll + one mask
    r_n = x_w * tap(0) + x * tap(1) + x_e * tap(2)
    acc = acc + jnp.where(m_top, pltpu.roll(r_n, shift=W, axis=1), 0.0)
    # south row (kh = 2)
    r_s = x_w * tap(6) + x * tap(7) + x_e * tap(8)
    acc = acc + jnp.where(m_bot, pltpu.roll(r_s, shift=P - W, axis=1), 0.0)
    return acc + b


def ghost_bottleneck_kernel(x_ref,
                            w_g1p_ref, b_g1p_ref, w_g1c_ref, b_g1c_ref,
                            w_g2pa_ref, w_g2pb_ref, b_g2p_ref, w_g2c_ref, b_g2c_ref,
                            w_sdw_ref, b_sdw_ref,
                            w_spwt_ref, b_spwt_ref, w_spwb_ref, b_spwb_ref,
                            out_ref, *, H, W, c2, out_channel, mxu_dtype):
    P = H * W
    x = x_ref[0]                                   # (Cin, P) f32

    # Edge masks for the 3x3 depthwise convs (shared by all three calls).
    pix = lax.broadcasted_iota(jnp.int32, (1, P), 1)
    col = pix % W
    masks = (col >= 1,                 # west neighbour valid
             col <= W - 2,             # east neighbour valid
             pix >= W,                 # north neighbour valid
             pix < (H - 1) * W)        # south neighbour valid

    # --- GhostModule(in -> hidden), ReLU ---
    x1 = jnp.maximum(_pw(x, w_g1p_ref[...], b_g1p_ref[...], mxu_dtype), 0.0)     # (c1, P)
    x2 = jnp.maximum(_dw3x3(x1, w_g1c_ref[...], b_g1c_ref[...], masks, W, P), 0.0)

    # --- stride == 1: no middle strided depthwise block ---

    # --- GhostModule(hidden -> out), linear; primary conv split => no concat ---
    y1 = (jnp.dot(w_g2pa_ref[...].astype(mxu_dtype), x1.astype(mxu_dtype),
                  preferred_element_type=jnp.float32)
          + jnp.dot(w_g2pb_ref[...].astype(mxu_dtype), x2.astype(mxu_dtype),
                    preferred_element_type=jnp.float32)
          + b_g2p_ref[...])                                                       # (c2, P)
    y2 = _dw3x3(y1, w_g2c_ref[...], b_g2c_ref[...], masks, W, P)                  # (c2, P)

    # --- shortcut: dw3x3(in)+BN then 1x1(in->out)+BN, pointwise split top/bottom ---
    s = _dw3x3(x, w_sdw_ref[...], b_sdw_ref[...], masks, W, P)                    # (Cin, P)
    s_top = _pw(s, w_spwt_ref[...], b_spwt_ref[...], mxu_dtype)                   # (c2, P)
    s_bot = _pw(s, w_spwb_ref[...], b_spwb_ref[...], mxu_dtype)                   # (out-c2, P)

    # Two disjoint channel-slice stores: no concat + slice of the ghost output.
    out_ref[0, :c2, :] = (y1 + s_top).astype(out_ref.dtype)
    out_ref[0, c2:, :] = (y2[:out_channel - c2, :] + s_bot).astype(out_ref.dtype)


# ---------------------------------------------------------------------------
# Wrapper
# ---------------------------------------------------------------------------
def ghost_bottleneck(x, params, out_channel, *, mxu_dtype=jnp.float32):
    """x: (N, Cin, H, W) float32 (PyTorch NCHW). Returns (N, out_channel, H, W)."""
    N, Cin, H, W = x.shape
    P = H * W
    c1 = params["w_g1p"].shape[0]
    hidden = params["w_g2p"].shape[1]
    c2 = params["w_g2p"].shape[0]
    assert hidden == 2 * c1, "GhostModule-1 concat must not truncate (hidden even)"
    assert c2 <= out_channel <= 2 * c2
    assert P % 128 == 0 and Cin % 8 == 0 and out_channel % 8 == 0

    # Split weights host-side so the kernel never concatenates along channels.
    w_g2pa = params["w_g2p"][:, :c1]
    w_g2pb = params["w_g2p"][:, c1:]
    w_spwt = params["w_spw"][:c2]
    w_spwb = params["w_spw"][c2:]
    b_spwt = params["b_spw"][:c2]
    b_spwb = params["b_spw"][c2:]

    weight_args = [
        params["w_g1p"], params["b_g1p"], params["w_g1c"], params["b_g1c"],
        w_g2pa, w_g2pb, params["b_g2p"], params["w_g2c"], params["b_g2c"],
        params["w_sdw"], params["b_sdw"],
        w_spwt, b_spwt, w_spwb, b_spwb,
    ]

    # Weights have constant block indices -> fetched once across the grid.
    def const_spec(a):
        nd = a.ndim
        return pl.BlockSpec(a.shape, lambda n, _nd=nd: (0,) * _nd)

    in_specs = ([pl.BlockSpec((1, Cin, P), lambda n: (n, 0, 0))]
                + [const_spec(a) for a in weight_args])
    out_specs = pl.BlockSpec((1, out_channel, P), lambda n: (n, 0, 0))

    # Advisory cost estimate for XLA's scheduler.
    mm_flops = 2 * P * (Cin * c1 + 2 * c1 * c2 + Cin * out_channel)
    dw_flops = 2 * P * 9 * (c1 + c2 + Cin)
    flops = N * (mm_flops + dw_flops)
    bytes_accessed = 4 * (x.size + N * out_channel * P
                          + sum(int(a.size) for a in weight_args))

    kernel = functools.partial(
        ghost_bottleneck_kernel, H=H, W=W, c2=c2,
        out_channel=out_channel, mxu_dtype=mxu_dtype)

    out = pl.pallas_call(
        kernel,
        out_shape=jax.ShapeDtypeStruct((N, out_channel, P), x.dtype),
        grid_spec=pltpu.PrefetchScalarGridSpec(
            num_scalar_prefetch=0,
            grid=(N,),
            in_specs=in_specs,
            out_specs=out_specs),
        compiler_params=pltpu.CompilerParams(
            # Keep the batch axis parallel so v7x's two TensorCores split the work.
            dimension_semantics=("parallel",)),
        cost_estimate=pl.CostEstimate(
            flops=int(flops), transcendentals=0,
            bytes_accessed=int(bytes_accessed)),
    )(x.reshape(N, Cin, P), *weight_args)

    return out.reshape(N, out_channel, H, W)


# ---------------------------------------------------------------------------
# Deterministic synthetic parameters (PyTorch conv layouts, BN folded)
# ---------------------------------------------------------------------------
def _bn_fold(key, c):
    k1, k2, k3, k4 = jax.random.split(key, 4)
    gamma = jax.random.uniform(k1, (c,), minval=0.5, maxval=1.5)
    beta = jax.random.normal(k2, (c,)) * 0.1
    mean = jax.random.normal(k3, (c,)) * 0.1
    var = jax.random.uniform(k4, (c,), minval=0.5, maxval=1.5)
    scale = gamma / jnp.sqrt(var + 1e-5)
    shift = beta - mean * scale
    return scale, shift


def _make_pw(key, cin, cout):
    kw, kb = jax.random.split(key)
    w = jax.random.normal(kw, (cout, cin, 1, 1)) / math.sqrt(cin)   # PyTorch (O,I,1,1)
    scale, shift = _bn_fold(kb, cout)
    w_folded = (w[:, :, 0, 0] * scale[:, None]).astype(jnp.float32)       # (Cout, Cin)
    return w_folded, shift.reshape(cout, 1).astype(jnp.float32)


def _make_dw(key, c):
    kw, kb = jax.random.split(key)
    w = jax.random.normal(kw, (c, 1, 3, 3)) / 3.0                   # PyTorch (C,1,3,3)
    scale, shift = _bn_fold(kb, c)
    w_folded = (w[:, 0].reshape(c, 9) * scale[:, None]).astype(jnp.float32)  # (C, 9)
    return w_folded, shift.reshape(c, 1).astype(jnp.float32)


def make_params(key, in_ch, hidden_ch, out_ch):
    c1 = math.ceil(hidden_ch / 2)   # GhostModule 1 init/new channels
    c2 = math.ceil(out_ch / 2)      # GhostModule 2 init/new channels
    ks = jax.random.split(key, 6)
    p = {}
    p["w_g1p"], p["b_g1p"] = _make_pw(ks[0], in_ch, c1)
    p["w_g1c"], p["b_g1c"] = _make_dw(ks[1], c1)
    p["w_g2p"], p["b_g2p"] = _make_pw(ks[2], hidden_ch, c2)
    p["w_g2c"], p["b_g2c"] = _make_dw(ks[3], c2)
    p["w_sdw"], p["b_sdw"] = _make_dw(ks[4], in_ch)
    p["w_spw"], p["b_spw"] = _make_pw(ks[5], in_ch, out_ch)
    return p


# ---------------------------------------------------------------------------
# Pure-JAX reference (NCHW, f32) for correctness check
# ---------------------------------------------------------------------------
def _ref_pw(x, w, b):
    return jnp.einsum("nchw,oc->nohw", x, w) + b.reshape(1, -1, 1, 1)


def _ref_dw(x, w9, b):
    C = x.shape[1]
    k = w9.reshape(C, 1, 3, 3)
    y = lax.conv_general_dilated(x, k, (1, 1), "SAME",
                                 dimension_numbers=("NCHW", "OIHW", "NCHW"),
                                 feature_group_count=C)
    return y + b.reshape(1, C, 1, 1)


def reference_forward(x, p, out_ch):
    x1 = jax.nn.relu(_ref_pw(x, p["w_g1p"], p["b_g1p"]))
    x2 = jax.nn.relu(_ref_dw(x1, p["w_g1c"], p["b_g1c"]))
    h = jnp.concatenate([x1, x2], axis=1)
    y1 = _ref_pw(h, p["w_g2p"], p["b_g2p"])
    y2 = _ref_dw(y1, p["w_g2c"], p["b_g2c"])
    ghost = jnp.concatenate([y1, y2], axis=1)[:, :out_ch]
    s = _ref_dw(x, p["w_sdw"], p["b_sdw"])
    s = _ref_pw(s, p["w_spw"], p["b_spw"])
    return ghost + s


# ---------------------------------------------------------------------------
if __name__ == "__main__":
    key = jax.random.PRNGKey(0)
    k_x, k_p = jax.random.split(key)

    N, H, W = 2, 16, 16
    in_ch, hidden_ch, out_ch, stride = 16, 32, 24, 1
    assert stride == 1

    x = jax.random.normal(k_x, (N, in_ch, H, W), dtype=jnp.float32)   # NCHW
    params = make_params(k_p, in_ch, hidden_ch, out_ch)

    ref = jax.block_until_ready(reference_forward(x, params, out_ch))

    # f32 MXU operands: tight check against the f32 reference.
    out_f32 = jax.block_until_ready(
        ghost_bottleneck(x, params, out_ch, mxu_dtype=jnp.float32))
    assert out_f32.shape == (N, out_ch, H, W)
    if not jnp.allclose(out_f32, ref, rtol=1e-4, atol=1e-4):
        raise AssertionError("Pallas GhostBottleneck (f32 MXU) mismatch vs reference")

    # bf16 MXU operands (v6e/v7x fast path), f32 accumulate: looser sanity check.
    out_bf16 = jax.block_until_ready(
        ghost_bottleneck(x, params, out_ch, mxu_dtype=jnp.bfloat16))
    if not jnp.allclose(out_bf16, ref, rtol=5e-2, atol=1e-1):
        raise AssertionError("Pallas GhostBottleneck (bf16 MXU) mismatch vs reference")

    print("KERNEL_OK")
</pallas_src>

<mosaic_0001>
module attributes {stable_mosaic.version = 11 : i64} {
  func.func @ghost_bottleneck_kernel(%arg0: i32, %arg1: memref<1x16x256xf32, #tpu.memory_space<vmem>>, %arg2: memref<16x16xf32, #tpu.memory_space<vmem>>, %arg3: memref<16x1xf32, #tpu.memory_space<vmem>>, %arg4: memref<16x9xf32, #tpu.memory_space<vmem>>, %arg5: memref<16x1xf32, #tpu.memory_space<vmem>>, %arg6: memref<12x16xf32, #tpu.memory_space<vmem>>, %arg7: memref<12x16xf32, #tpu.memory_space<vmem>>, %arg8: memref<12x1xf32, #tpu.memory_space<vmem>>, %arg9: memref<12x9xf32, #tpu.memory_space<vmem>>, %arg10: memref<12x1xf32, #tpu.memory_space<vmem>>, %arg11: memref<16x9xf32, #tpu.memory_space<vmem>>, %arg12: memref<16x1xf32, #tpu.memory_space<vmem>>, %arg13: memref<12x16xf32, #tpu.memory_space<vmem>>, %arg14: memref<12x1xf32, #tpu.memory_space<vmem>>, %arg15: memref<12x16xf32, #tpu.memory_space<vmem>>, %arg16: memref<12x1xf32, #tpu.memory_space<vmem>>, %arg17: memref<1x24x256xf32, #tpu.memory_space<vmem>>) attributes {dimension_semantics = [#tpu.dimension_semantics<parallel>], iteration_bounds = array<i64: 2>, scalar_prefetch = 0 : i64, scratch_operands = 0 : i64, tpu.core_type = #tpu.core_type<tc>, window_params = [{transform_indices = @transform_0, window_bounds = array<i64: 1, 16, 256>}, {pipeline_mode = #tpu.pipeline_mode<synchronous>, transform_indices = @transform_1, window_bounds = array<i64: 16, 16>}, {pipeline_mode = #tpu.pipeline_mode<synchronous>, transform_indices = @transform_2, window_bounds = array<i64: 16, 1>}, {pipeline_mode = #tpu.pipeline_mode<synchronous>, transform_indices = @transform_3, window_bounds = array<i64: 16, 9>}, {pipeline_mode = #tpu.pipeline_mode<synchronous>, transform_indices = @transform_4, window_bounds = array<i64: 16, 1>}, {pipeline_mode = #tpu.pipeline_mode<synchronous>, transform_indices = @transform_5, window_bounds = array<i64: 12, 16>}, {pipeline_mode = #tpu.pipeline_mode<synchronous>, transform_indices = @transform_6, window_bounds = array<i64: 12, 16>}, {pipeline_mode = #tpu.pipeline_mode<synchronous>, transform_indices = @transform_7, window_bounds = array<i64: 12, 1>}, {pipeline_mode = #tpu.pipeline_mode<synchronous>, transform_indices = @transform_8, window_bounds = array<i64: 12, 9>}, {pipeline_mode = #tpu.pipeline_mode<synchronous>, transform_indices = @transform_9, window_bounds = array<i64: 12, 1>}, {pipeline_mode = #tpu.pipeline_mode<synchronous>, transform_indices = @transform_10, window_bounds = array<i64: 16, 9>}, {pipeline_mode = #tpu.pipeline_mode<synchronous>, transform_indices = @transform_11, window_bounds = array<i64: 16, 1>}, {pipeline_mode = #tpu.pipeline_mode<synchronous>, transform_indices = @transform_12, window_bounds = array<i64: 12, 16>}, {pipeline_mode = #tpu.pipeline_mode<synchronous>, transform_indices = @transform_13, window_bounds = array<i64: 12, 1>}, {pipeline_mode = #tpu.pipeline_mode<synchronous>, transform_indices = @transform_14, window_bounds = array<i64: 12, 16>}, {pipeline_mode = #tpu.pipeline_mode<synchronous>, transform_indices = @transform_15, window_bounds = array<i64: 12, 1>}, {transform_indices = @transform_16, window_bounds = array<i64: 1, 24, 256>}]} {
    %c0 = arith.constant 0 : index
    %c0_0 = arith.constant 0 : index
    %c0_1 = arith.constant 0 : index
    %0 = vector.load %arg1[%c0, %c0_0, %c0_1] : memref<1x16x256xf32, #tpu.memory_space<vmem>>, vector<1x16x256xf32>
    %1 = vector.shape_cast %0 : vector<1x16x256xf32> to vector<16x256xf32>
    %2 = tpu.iota {dimensions = array<i32: 1>} : vector<1x256xi32>
    %c16_i32 = arith.constant 16 : i32
    %c0_i32 = arith.constant 0 : i32
    %3 = arith.cmpi eq, %c16_i32, %c0_i32 : i32
    %c1_i32 = arith.constant 1 : i32
    %4 = arith.select %3, %c1_i32, %c16_i32 : i32
    %5 = vector.broadcast %4 : i32 to vector<1x256xi32>
    %6 = arith.remsi %2, %5 : vector<1x256xi32>
    %c0_i32_2 = arith.constant 0 : i32
    %7 = vector.broadcast %c0_i32_2 : i32 to vector<1x256xi32>
    %8 = arith.cmpi ne, %6, %7 : vector<1x256xi32>
    %c0_i32_3 = arith.constant 0 : i32
    %9 = vector.broadcast %c0_i32_3 : i32 to vector<1x256xi32>
    %10 = arith.cmpi slt, %6, %9 : vector<1x256xi32>
    %c0_i32_4 = arith.constant 0 : i32
    %11 = arith.cmpi slt, %4, %c0_i32_4 : i32
    %12 = vector.broadcast %11 : i1 to vector<1x256xi1>
    %13 = vector.broadcast %12 : vector<1x256xi1> to vector<1x256xi1>
    %14 = arith.xori %10, %13 : vector<1x256xi1>
    %15 = arith.andi %14, %8 : vector<1x256xi1>
    %16 = vector.broadcast %4 : i32 to vector<1x256xi32>
    %17 = arith.addi %6, %16 : vector<1x256xi32>
    %18 = arith.select %15, %17, %6 : vector<1x256xi1>, vector<1x256xi32>
    %c1_i32_5 = arith.constant 1 : i32
    %19 = vector.broadcast %c1_i32_5 : i32 to vector<1x256xi32>
    %20 = arith.cmpi sge, %18, %19 : vector<1x256xi32>
    %c14_i32 = arith.constant 14 : i32
    %21 = vector.broadcast %c14_i32 : i32 to vector<1x256xi32>
    %22 = arith.cmpi sle, %18, %21 : vector<1x256xi32>
    %c16_i32_6 = arith.constant 16 : i32
    %23 = vector.broadcast %c16_i32_6 : i32 to vector<1x256xi32>
    %24 = arith.cmpi sge, %2, %23 : vector<1x256xi32>
    %c240_i32 = arith.constant 240 : i32
    %25 = vector.broadcast %c240_i32 : i32 to vector<1x256xi32>
    %26 = arith.cmpi slt, %2, %25 : vector<1x256xi32>
    %c0_7 = arith.constant 0 : index
    %c0_8 = arith.constant 0 : index
    %27 = vector.load %arg2[%c0_7, %c0_8] : memref<16x16xf32, #tpu.memory_space<vmem>>, vector<16x16xf32>
    %c0_9 = arith.constant 0 : index
    %c0_10 = arith.constant 0 : index
    %28 = vector.load %arg3[%c0_9, %c0_10] : memref<16x1xf32, #tpu.memory_space<vmem>>, vector<16x1xf32>
    %cst = arith.constant dense<0.000000e+00> : vector<16x256xf32>
    %29 = tpu.matmul %27, %1, %cst {dimension_numbers = #tpu.dot_dimension_numbers<[1], [0], [0], [1], [0, 0, 1, 1], [], []>} : vector<16x16xf32>, vector<16x256xf32>, vector<16x256xf32> -> vector<16x256xf32>
    %30 = vector.broadcast %28 : vector<16x1xf32> to vector<16x256xf32>
    %31 = arith.addf %29, %30 : vector<16x256xf32>
    %cst_11 = arith.constant 0.000000e+00 : f32
    %32 = vector.broadcast %cst_11 : f32 to vector<16x256xf32>
    %33 = arith.maximumf %31, %32 : vector<16x256xf32>
    %c0_12 = arith.constant 0 : index
    %c0_13 = arith.constant 0 : index
    %34 = vector.load %arg4[%c0_12, %c0_13] : memref<16x9xf32, #tpu.memory_space<vmem>>, vector<16x9xf32>
    %c0_14 = arith.constant 0 : index
    %c0_15 = arith.constant 0 : index
    %35 = vector.load %arg5[%c0_14, %c0_15] : memref<16x1xf32, #tpu.memory_space<vmem>>, vector<16x1xf32>
    %c1_i32_16 = arith.constant 1 : i32
    %36 = tpu.dynamic_rotate %33 by %c1_i32_16 dim 1 : vector<16x256xf32>, i32 -> vector<16x256xf32>
    %cst_17 = arith.constant 0.000000e+00 : f32
    %37 = vector.shape_cast %20 : vector<1x256xi1> to vector<1x256xi1>
    %38 = vector.broadcast %37 : vector<1x256xi1> to vector<16x256xi1>
    %39 = vector.broadcast %cst_17 : f32 to vector<16x256xf32>
    %40 = arith.select %38, %36, %39 : vector<16x256xi1>, vector<16x256xf32>
    %c255_i32 = arith.constant 255 : i32
    %41 = tpu.dynamic_rotate %33 by %c255_i32 dim 1 : vector<16x256xf32>, i32 -> vector<16x256xf32>
    %cst_18 = arith.constant 0.000000e+00 : f32
    %42 = vector.shape_cast %22 : vector<1x256xi1> to vector<1x256xi1>
    %43 = vector.broadcast %42 : vector<1x256xi1> to vector<16x256xi1>
    %44 = vector.broadcast %cst_18 : f32 to vector<16x256xf32>
    %45 = arith.select %43, %41, %44 : vector<16x256xi1>, vector<16x256xf32>
    %46 = vector.extract_strided_slice %34 {offsets = [0, 3], sizes = [16, 1], strides = [1, 1]} : vector<16x9xf32> to vector<16x1xf32>
    %47 = vector.broadcast %46 : vector<16x1xf32> to vector<16x256xf32>
    %48 = arith.mulf %40, %47 : vector<16x256xf32>
    %49 = vector.extract_strided_slice %34 {offsets = [0, 4], sizes = [16, 1], strides = [1, 1]} : vector<16x9xf32> to vector<16x1xf32>
    %50 = vector.broadcast %49 : vector<16x1xf32> to vector<16x256xf32>
    %51 = arith.mulf %33, %50 : vector<16x256xf32>
    %52 = arith.addf %48, %51 : vector<16x256xf32>
    %53 = vector.extract_strided_slice %34 {offsets = [0, 5], sizes = [16, 1], strides = [1, 1]} : vector<16x9xf32> to vector<16x1xf32>
    %54 = vector.broadcast %53 : vector<16x1xf32> to vector<16x256xf32>
    %55 = arith.mulf %45, %54 : vector<16x256xf32>
    %56 = arith.addf %52, %55 : vector<16x256xf32>
    %57 = vector.extract_strided_slice %34 {offsets = [0, 0], sizes = [16, 1], strides = [1, 1]} : vector<16x9xf32> to vector<16x1xf32>
    %58 = vector.broadcast %57 : vector<16x1xf32> to vector<16x256xf32>
    %59 = arith.mulf %40, %58 : vector<16x256xf32>
    %60 = vector.extract_strided_slice %34 {offsets = [0, 1], sizes = [16, 1], strides = [1, 1]} : vector<16x9xf32> to vector<16x1xf32>
    %61 = vector.broadcast %60 : vector<16x1xf32> to vector<16x256xf32>
    %62 = arith.mulf %33, %61 : vector<16x256xf32>
    %63 = arith.addf %59, %62 : vector<16x256xf32>
    %64 = vector.extract_strided_slice %34 {offsets = [0, 2], sizes = [16, 1], strides = [1, 1]} : vector<16x9xf32> to vector<16x1xf32>
    %65 = vector.broadcast %64 : vector<16x1xf32> to vector<16x256xf32>
    %66 = arith.mulf %45, %65 : vector<16x256xf32>
    %67 = arith.addf %63, %66 : vector<16x256xf32>
    %c16_i32_19 = arith.constant 16 : i32
    %68 = tpu.dynamic_rotate %67 by %c16_i32_19 dim 1 : vector<16x256xf32>, i32 -> vector<16x256xf32>
    %cst_20 = arith.constant 0.000000e+00 : f32
    %69 = vector.shape_cast %24 : vector<1x256xi1> to vector<1x256xi1>
    %70 = vector.broadcast %69 : vector<1x256xi1> to vector<16x256xi1>
    %71 = vector.broadcast %cst_20 : f32 to vector<16x256xf32>
    %72 = arith.select %70, %68, %71 : vector<16x256xi1>, vector<16x256xf32>
    %73 = arith.addf %56, %72 : vector<16x256xf32>
    %74 = vector.extract_strided_slice %34 {offsets = [0, 6], sizes = [16, 1], strides = [1, 1]} : vector<16x9xf32> to vector<16x1xf32>
    %75 = vector.broadcast %74 : vector<16x1xf32> to vector<16x256xf32>
    %76 = arith.mulf %40, %75 : vector<16x256xf32>
    %77 = vector.extract_strided_slice %34 {offsets = [0, 7], sizes = [16, 1], strides = [1, 1]} : vector<16x9xf32> to vector<16x1xf32>
    %78 = vector.broadcast %77 : vector<16x1xf32> to vector<16x256xf32>
    %79 = arith.mulf %33, %78 : vector<16x256xf32>
    %80 = arith.addf %76, %79 : vector<16x256xf32>
    %81 = vector.extract_strided_slice %34 {offsets = [0, 8], sizes = [16, 1], strides = [1, 1]} : vector<16x9xf32> to vector<16x1xf32>
    %82 = vector.broadcast %81 : vector<16x1xf32> to vector<16x256xf32>
    %83 = arith.mulf %45, %82 : vector<16x256xf32>
    %84 = arith.addf %80, %83 : vector<16x256xf32>
    %c240_i32_21 = arith.constant 240 : i32
    %85 = tpu.dynamic_rotate %84 by %c240_i32_21 dim 1 : vector<16x256xf32>, i32 -> vector<16x256xf32>
    %cst_22 = arith.constant 0.000000e+00 : f32
    %86 = vector.shape_cast %26 : vector<1x256xi1> to vector<1x256xi1>
    %87 = vector.broadcast %86 : vector<1x256xi1> to vector<16x256xi1>
    %88 = vector.broadcast %cst_22 : f32 to vector<16x256xf32>
    %89 = arith.select %87, %85, %88 : vector<16x256xi1>, vector<16x256xf32>
    %90 = arith.addf %73, %89 : vector<16x256xf32>
    %91 = vector.broadcast %35 : vector<16x1xf32> to vector<16x256xf32>
    %92 = arith.addf %90, %91 : vector<16x256xf32>
    %cst_23 = arith.constant 0.000000e+00 : f32
    %93 = vector.broadcast %cst_23 : f32 to vector<16x256xf32>
    %94 = arith.maximumf %92, %93 : vector<16x256xf32>
    %c0_24 = arith.constant 0 : index
    %c0_25 = arith.constant 0 : index
    %95 = vector.load %arg6[%c0_24, %c0_25] : memref<12x16xf32, #tpu.memory_space<vmem>>, vector<12x16xf32>
    %cst_26 = arith.constant dense<0.000000e+00> : vector<12x256xf32>
    %96 = tpu.matmul %95, %33, %cst_26 {dimension_numbers = #tpu.dot_dimension_numbers<[1], [0], [0], [1], [0, 0, 1, 1], [], []>} : vector<12x16xf32>, vector<16x256xf32>, vector<12x256xf32> -> vector<12x256xf32>
    %c0_27 = arith.constant 0 : index
    %c0_28 = arith.constant 0 : index
    %97 = vector.load %arg7[%c0_27, %c0_28] : memref<12x16xf32, #tpu.memory_space<vmem>>, vector<12x16xf32>
    %cst_29 = arith.constant dense<0.000000e+00> : vector<12x256xf32>
    %98 = tpu.matmul %97, %94, %cst_29 {dimension_numbers = #tpu.dot_dimension_numbers<[1], [0], [0], [1], [0, 0, 1, 1], [], []>} : vector<12x16xf32>, vector<16x256xf32>, vector<12x256xf32> -> vector<12x256xf32>
    %99 = arith.addf %96, %98 : vector<12x256xf32>
    %c0_30 = arith.constant 0 : index
    %c0_31 = arith.constant 0 : index
    %100 = vector.load %arg8[%c0_30, %c0_31] : memref<12x1xf32, #tpu.memory_space<vmem>>, vector<12x1xf32>
    %101 = vector.broadcast %100 : vector<12x1xf32> to vector<12x256xf32>
    %102 = arith.addf %99, %101 : vector<12x256xf32>
    %c0_32 = arith.constant 0 : index
    %c0_33 = arith.constant 0 : index
    %103 = vector.load %arg9[%c0_32, %c0_33] : memref<12x9xf32, #tpu.memory_space<vmem>>, vector<12x9xf32>
    %c0_34 = arith.constant 0 : index
    %c0_35 = arith.constant 0 : index
    %104 = vector.load %arg10[%c0_34, %c0_35] : memref<12x1xf32, #tpu.memory_space<vmem>>, vector<12x1xf32>
    %c1_i32_36 = arith.constant 1 : i32
    %105 = tpu.dynamic_rotate %102 by %c1_i32_36 dim 1 : vector<12x256xf32>, i32 -> vector<12x256xf32>
    %cst_37 = arith.constant 0.000000e+00 : f32
    %106 = vector.shape_cast %20 : vector<1x256xi1> to vector<1x256xi1>
    %107 = vector.broadcast %106 : vector<1x256xi1> to vector<12x256xi1>
    %108 = vector.broadcast %cst_37 : f32 to vector<12x256xf32>
    %109 = arith.select %107, %105, %108 : vector<12x256xi1>, vector<12x256xf32>
    %c255_i32_38 = arith.constant 255 : i32
    %110 = tpu.dynamic_rotate %102 by %c255_i32_38 dim 1 : vector<12x256xf32>, i32 -> vector<12x256xf32>
    %cst_39 = arith.constant 0.000000e+00 : f32
    %111 = vector.shape_cast %22 : vector<1x256xi1> to vector<1x256xi1>
    %112 = vector.broadcast %111 : vector<1x256xi1> to vector<12x256xi1>
    %113 = vector.broadcast %cst_39 : f32 to vector<12x256xf32>
    %114 = arith.select %112, %110, %113 : vector<12x256xi1>, vector<12x256xf32>
    %115 = vector.extract_strided_slice %103 {offsets = [0, 3], sizes = [12, 1], strides = [1, 1]} : vector<12x9xf32> to vector<12x1xf32>
    %116 = vector.broadcast %115 : vector<12x1xf32> to vector<12x256xf32>
    %117 = arith.mulf %109, %116 : vector<12x256xf32>
    %118 = vector.extract_strided_slice %103 {offsets = [0, 4], sizes = [12, 1], strides = [1, 1]} : vector<12x9xf32> to vector<12x1xf32>
    %119 = vector.broadcast %118 : vector<12x1xf32> to vector<12x256xf32>
    %120 = arith.mulf %102, %119 : vector<12x256xf32>
    %121 = arith.addf %117, %120 : vector<12x256xf32>
    %122 = vector.extract_strided_slice %103 {offsets = [0, 5], sizes = [12, 1], strides = [1, 1]} : vector<12x9xf32> to vector<12x1xf32>
    %123 = vector.broadcast %122 : vector<12x1xf32> to vector<12x256xf32>
    %124 = arith.mulf %114, %123 : vector<12x256xf32>
    %125 = arith.addf %121, %124 : vector<12x256xf32>
    %126 = vector.extract_strided_slice %103 {offsets = [0, 0], sizes = [12, 1], strides = [1, 1]} : vector<12x9xf32> to vector<12x1xf32>
    %127 = vector.broadcast %126 : vector<12x1xf32> to vector<12x256xf32>
    %128 = arith.mulf %109, %127 : vector<12x256xf32>
    %129 = vector.extract_strided_slice %103 {offsets = [0, 1], sizes = [12, 1], strides = [1, 1]} : vector<12x9xf32> to vector<12x1xf32>
    %130 = vector.broadcast %129 : vector<12x1xf32> to vector<12x256xf32>
    %131 = arith.mulf %102, %130 : vector<12x256xf32>
    %132 = arith.addf %128, %131 : vector<12x256xf32>
    %133 = vector.extract_strided_slice %103 {offsets = [0, 2], sizes = [12, 1], strides = [1, 1]} : vector<12x9xf32> to vector<12x1xf32>
    %134 = vector.broadcast %133 : vector<12x1xf32> to vector<12x256xf32>
    %135 = arith.mulf %114, %134 : vector<12x256xf32>
    %136 = arith.addf %132, %135 : vector<12x256xf32>
    %c16_i32_40 = arith.constant 16 : i32
    %137 = tpu.dynamic_rotate %136 by %c16_i32_40 dim 1 : vector<12x256xf32>, i32 -> vector<12x256xf32>
    %cst_41 = arith.constant 0.000000e+00 : f32
    %138 = vector.shape_cast %24 : vector<1x256xi1> to vector<1x256xi1>
    %139 = vector.broadcast %138 : vector<1x256xi1> to vector<12x256xi1>
    %140 = vector.broadcast %cst_41 : f32 to vector<12x256xf32>
    %141 = arith.select %139, %137, %140 : vector<12x256xi1>, vector<12x256xf32>
    %142 = arith.addf %125, %141 : vector<12x256xf32>
    %143 = vector.extract_strided_slice %103 {offsets = [0, 6], sizes = [12, 1], strides = [1, 1]} : vector<12x9xf32> to vector<12x1xf32>
    %144 = vector.broadcast %143 : vector<12x1xf32> to vector<12x256xf32>
    %145 = arith.mulf %109, %144 : vector<12x256xf32>
    %146 = vector.extract_strided_slice %103 {offsets = [0, 7], sizes = [12, 1], strides = [1, 1]} : vector<12x9xf32> to vector<12x1xf32>
    %147 = vector.broadcast %146 : vector<12x1xf32> to vector<12x256xf32>
    %148 = arith.mulf %102, %147 : vector<12x256xf32>
    %149 = arith.addf %145, %148 : vector<12x256xf32>
    %150 = vector.extract_strided_slice %103 {offsets = [0, 8], sizes = [12, 1], strides = [1, 1]} : vector<12x9xf32> to vector<12x1xf32>
    %151 = vector.broadcast %150 : vector<12x1xf32> to vector<12x256xf32>
    %152 = arith.mulf %114, %151 : vector<12x256xf32>
    %153 = arith.addf %149, %152 : vector<12x256xf32>
    %c240_i32_42 = arith.constant 240 : i32
    %154 = tpu.dynamic_rotate %153 by %c240_i32_42 dim 1 : vector<12x256xf32>, i32 -> vector<12x256xf32>
    %cst_43 = arith.constant 0.000000e+00 : f32
    %155 = vector.shape_cast %26 : vector<1x256xi1> to vector<1x256xi1>
    %156 = vector.broadcast %155 : vector<1x256xi1> to vector<12x256xi1>
    %157 = vector.broadcast %cst_43 : f32 to vector<12x256xf32>
    %158 = arith.select %156, %154, %157 : vector<12x256xi1>, vector<12x256xf32>
    %159 = arith.addf %142, %158 : vector<12x256xf32>
    %160 = vector.broadcast %104 : vector<12x1xf32> to vector<12x256xf32>
    %161 = arith.addf %159, %160 : vector<12x256xf32>
    %c0_44 = arith.constant 0 : index
    %c0_45 = arith.constant 0 : index
    %162 = vector.load %arg11[%c0_44, %c0_45] : memref<16x9xf32, #tpu.memory_space<vmem>>, vector<16x9xf32>
    %c0_46 = arith.constant 0 : index
    %c0_47 = arith.constant 0 : index
    %163 = vector.load %arg12[%c0_46, %c0_47] : memref<16x1xf32, #tpu.memory_space<vmem>>, vector<16x1xf32>
    %c1_i32_48 = arith.constant 1 : i32
    %164 = tpu.dynamic_rotate %1 by %c1_i32_48 dim 1 : vector<16x256xf32>, i32 -> vector<16x256xf32>
    %cst_49 = arith.constant 0.000000e+00 : f32
    %165 = vector.shape_cast %20 : vector<1x256xi1> to vector<1x256xi1>
    %166 = vector.broadcast %165 : vector<1x256xi1> to vector<16x256xi1>
    %167 = vector.broadcast %cst_49 : f32 to vector<16x256xf32>
    %168 = arith.select %166, %164, %167 : vector<16x256xi1>, vector<16x256xf32>
    %c255_i32_50 = arith.constant 255 : i32
    %169 = tpu.dynamic_rotate %1 by %c255_i32_50 dim 1 : vector<16x256xf32>, i32 -> vector<16x256xf32>
    %cst_51 = arith.constant 0.000000e+00 : f32
    %170 = vector.shape_cast %22 : vector<1x256xi1> to vector<1x256xi1>
    %171 = vector.broadcast %170 : vector<1x256xi1> to vector<16x256xi1>
    %172 = vector.broadcast %cst_51 : f32 to vector<16x256xf32>
    %173 = arith.select %171, %169, %172 : vector<16x256xi1>, vector<16x256xf32>
    %174 = vector.extract_strided_slice %162 {offsets = [0, 3], sizes = [16, 1], strides = [1, 1]} : vector<16x9xf32> to vector<16x1xf32>
    %175 = vector.broadcast %174 : vector<16x1xf32> to vector<16x256xf32>
    %176 = arith.mulf %168, %175 : vector<16x256xf32>
    %177 = vector.extract_strided_slice %162 {offsets = [0, 4], sizes = [16, 1], strides = [1, 1]} : vector<16x9xf32> to vector<16x1xf32>
    %178 = vector.broadcast %177 : vector<16x1xf32> to vector<16x256xf32>
    %179 = arith.mulf %1, %178 : vector<16x256xf32>
    %180 = arith.addf %176, %179 : vector<16x256xf32>
    %181 = vector.extract_strided_slice %162 {offsets = [0, 5], sizes = [16, 1], strides = [1, 1]} : vector<16x9xf32> to vector<16x1xf32>
    %182 = vector.broadcast %181 : vector<16x1xf32> to vector<16x256xf32>
    %183 = arith.mulf %173, %182 : vector<16x256xf32>
    %184 = arith.addf %180, %183 : vector<16x256xf32>
    %185 = vector.extract_strided_slice %162 {offsets = [0, 0], sizes = [16, 1], strides = [1, 1]} : vector<16x9xf32> to vector<16x1xf32>
    %186 = vector.broadcast %185 : vector<16x1xf32> to vector<16x256xf32>
    %187 = arith.mulf %168, %186 : vector<16x256xf32>
    %188 = vector.extract_strided_slice %162 {offsets = [0, 1], sizes = [16, 1], strides = [1, 1]} : vector<16x9xf32> to vector<16x1xf32>
    %189 = vector.broadcast %188 : vector<16x1xf32> to vector<16x256xf32>
    %190 = arith.mulf %1, %189 : vector<16x256xf32>
    %191 = arith.addf %187, %190 : vector<16x256xf32>
    %192 = vector.extract_strided_slice %162 {offsets = [0, 2], sizes = [16, 1], strides = [1, 1]} : vector<16x9xf32> to vector<16x1xf32>
    %193 = vector.broadcast %192 : vector<16x1xf32> to vector<16x256xf32>
    %194 = arith.mulf %173, %193 : vector<16x256xf32>
    %195 = arith.addf %191, %194 : vector<16x256xf32>
    %c16_i32_52 = arith.constant 16 : i32
    %196 = tpu.dynamic_rotate %195 by %c16_i32_52 dim 1 : vector<16x256xf32>, i32 -> vector<16x256xf32>
    %cst_53 = arith.constant 0.000000e+00 : f32
    %197 = vector.shape_cast %24 : vector<1x256xi1> to vector<1x256xi1>
    %198 = vector.broadcast %197 : vector<1x256xi1> to vector<16x256xi1>
    %199 = vector.broadcast %cst_53 : f32 to vector<16x256xf32>
    %200 = arith.select %198, %196, %199 : vector<16x256xi1>, vector<16x256xf32>
    %201 = arith.addf %184, %200 : vector<16x256xf32>
    %202 = vector.extract_strided_slice %162 {offsets = [0, 6], sizes = [16, 1], strides = [1, 1]} : vector<16x9xf32> to vector<16x1xf32>
    %203 = vector.broadcast %202 : vector<16x1xf32> to vector<16x256xf32>
    %204 = arith.mulf %168, %203 : vector<16x256xf32>
    %205 = vector.extract_strided_slice %162 {offsets = [0, 7], sizes = [16, 1], strides = [1, 1]} : vector<16x9xf32> to vector<16x1xf32>
    %206 = vector.broadcast %205 : vector<16x1xf32> to vector<16x256xf32>
    %207 = arith.mulf %1, %206 : vector<16x256xf32>
    %208 = arith.addf %204, %207 : vector<16x256xf32>
    %209 = vector.extract_strided_slice %162 {offsets = [0, 8], sizes = [16, 1], strides = [1, 1]} : vector<16x9xf32> to vector<16x1xf32>
    %210 = vector.broadcast %209 : vector<16x1xf32> to vector<16x256xf32>
    %211 = arith.mulf %173, %210 : vector<16x256xf32>
    %212 = arith.addf %208, %211 : vector<16x256xf32>
    %c240_i32_54 = arith.constant 240 : i32
    %213 = tpu.dynamic_rotate %212 by %c240_i32_54 dim 1 : vector<16x256xf32>, i32 -> vector<16x256xf32>
    %cst_55 = arith.constant 0.000000e+00 : f32
    %214 = vector.shape_cast %26 : vector<1x256xi1> to vector<1x256xi1>
    %215 = vector.broadcast %214 : vector<1x256xi1> to vector<16x256xi1>
    %216 = vector.broadcast %cst_55 : f32 to vector<16x256xf32>
    %217 = arith.select %215, %213, %216 : vector<16x256xi1>, vector<16x256xf32>
    %218 = arith.addf %201, %217 : vector<16x256xf32>
    %219 = vector.broadcast %163 : vector<16x1xf32> to vector<16x256xf32>
    %220 = arith.addf %218, %219 : vector<16x256xf32>
    %c0_56 = arith.constant 0 : index
    %c0_57 = arith.constant 0 : index
    %221 = vector.load %arg13[%c0_56, %c0_57] : memref<12x16xf32, #tpu.memory_space<vmem>>, vector<12x16xf32>
    %c0_58 = arith.constant 0 : index
    %c0_59 = arith.constant 0 : index
    %222 = vector.load %arg14[%c0_58, %c0_59] : memref<12x1xf32, #tpu.memory_space<vmem>>, vector<12x1xf32>
    %cst_60 = arith.constant dense<0.000000e+00> : vector<12x256xf32>
    %223 = tpu.matmul %221, %220, %cst_60 {dimension_numbers = #tpu.dot_dimension_numbers<[1], [0], [0], [1], [0, 0, 1, 1], [], []>} : vector<12x16xf32>, vector<16x256xf32>, vector<12x256xf32> -> vector<12x256xf32>
    %224 = vector.broadcast %222 : vector<12x1xf32> to vector<12x256xf32>
    %225 = arith.addf %223, %224 : vector<12x256xf32>
    %c0_61 = arith.constant 0 : index
    %c0_62 = arith.constant 0 : index
    %226 = vector.load %arg15[%c0_61, %c0_62] : memref<12x16xf32, #tpu.memory_space<vmem>>, vector<12x16xf32>
    %c0_63 = arith.constant 0 : index
    %c0_64 = arith.constant 0 : index
    %227 = vector.load %arg16[%c0_63, %c0_64] : memref<12x1xf32, #tpu.memory_space<vmem>>, vector<12x1xf32>
    %cst_65 = arith.constant dense<0.000000e+00> : vector<12x256xf32>
    %228 = tpu.matmul %226, %220, %cst_65 {dimension_numbers = #tpu.dot_dimension_numbers<[1], [0], [0], [1], [0, 0, 1, 1], [], []>} : vector<12x16xf32>, vector<16x256xf32>, vector<12x256xf32> -> vector<12x256xf32>
    %229 = vector.broadcast %227 : vector<12x1xf32> to vector<12x256xf32>
    %230 = arith.addf %228, %229 : vector<12x256xf32>
    %231 = arith.addf %102, %225 : vector<12x256xf32>
    %c0_66 = arith.constant 0 : index
    %c0_67 = arith.constant 0 : index
    %c0_68 = arith.constant 0 : index
    %232 = vector.load %arg17[%c0_66, %c0_67, %c0_68] : memref<1x24x256xf32, #tpu.memory_space<vmem>>, vector<1x12x256xf32>
    %233 = vector.shape_cast %232 : vector<1x12x256xf32> to vector<12x256xf32>
    %234 = vector.shape_cast %231 : vector<12x256xf32> to vector<1x12x256xf32>
    tpu.vector_store %arg17[%c0_66, %c0_67, %c0_68], %234 {strides = array<i32>} : memref<1x24x256xf32, #tpu.memory_space<vmem>>, vector<1x12x256xf32>,
    %235 = arith.addf %161, %230 : vector<12x256xf32>
    %c0_69 = arith.constant 0 : index
    %c12 = arith.constant 12 : index
    %c0_70 = arith.constant 0 : index
    %236 = vector.load %arg17[%c0_69, %c12, %c0_70] : memref<1x24x256xf32, #tpu.memory_space<vmem>>, vector<1x12x256xf32>
    %237 = vector.shape_cast %236 : vector<1x12x256xf32> to vector<12x256xf32>
    %238 = vector.shape_cast %235 : vector<12x256xf32> to vector<1x12x256xf32>
    tpu.vector_store %arg17[%c0_69, %c12, %c0_70], %238 {strides = array<i32>} : memref<1x24x256xf32, #tpu.memory_space<vmem>>, vector<1x12x256xf32>,
    return
  }
  func.func @transform_0(%arg0: i32) -> (i32, i32, i32) {
    %c0_i32 = arith.constant 0 : i32
    %c0_i32_0 = arith.constant 0 : i32
    %c0_i32_1 = arith.constant 0 : i32
    return %arg0, %c0_i32, %c0_i32_0 : i32, i32, i32
  }
  func.func @transform_1(%arg0: i32) -> (i32, i32) {
    %c0_i32 = arith.constant 0 : i32
    %c0_i32_0 = arith.constant 0 : i32
    %c0_i32_1 = arith.constant 0 : i32
    return %c0_i32, %c0_i32_0 : i32, i32
  }
  func.func @transform_2(%arg0: i32) -> (i32, i32) {
    %c0_i32 = arith.constant 0 : i32
    %c0_i32_0 = arith.constant 0 : i32
    %c0_i32_1 = arith.constant 0 : i32
    return %c0_i32, %c0_i32_0 : i32, i32
  }
  func.func @transform_3(%arg0: i32) -> (i32, i32) {
    %c0_i32 = arith.constant 0 : i32
    %c0_i32_0 = arith.constant 0 : i32
    %c0_i32_1 = arith.constant 0 : i32
    return %c0_i32, %c0_i32_0 : i32, i32
  }
  func.func @transform_4(%arg0: i32) -> (i32, i32) {
    %c0_i32 = arith.constant 0 : i32
    %c0_i32_0 = arith.constant 0 : i32
    %c0_i32_1 = arith.constant 0 : i32
    return %c0_i32, %c0_i32_0 : i32, i32
  }
  func.func @transform_5(%arg0: i32) -> (i32, i32) {
    %c0_i32 = arith.constant 0 : i32
    %c0_i32_0 = arith.constant 0 : i32
    %c0_i32_1 = arith.constant 0 : i32
    return %c0_i32, %c0_i32_0 : i32, i32
  }
  func.func @transform_6(%arg0: i32) -> (i32, i32) {
    %c0_i32 = arith.constant 0 : i32
    %c0_i32_0 = arith.constant 0 : i32
    %c0_i32_1 = arith.constant 0 : i32
    return %c0_i32, %c0_i32_0 : i32, i32
  }
  func.func @transform_7(%arg0: i32) -> (i32, i32) {
    %c0_i32 = arith.constant 0 : i32
    %c0_i32_0 = arith.constant 0 : i32
    %c0_i32_1 = arith.constant 0 : i32
    return %c0_i32, %c0_i32_0 : i32, i32
  }
  func.func @transform_8(%arg0: i32) -> (i32, i32) {
    %c0_i32 = arith.constant 0 : i32
    %c0_i32_0 = arith.constant 0 : i32
    %c0_i32_1 = arith.constant 0 : i32
    return %c0_i32, %c0_i32_0 : i32, i32
  }
  func.func @transform_9(%arg0: i32) -> (i32, i32) {
    %c0_i32 = arith.constant 0 : i32
    %c0_i32_0 = arith.constant 0 : i32
    %c0_i32_1 = arith.constant 0 : i32
    return %c0_i32, %c0_i32_0 : i32, i32
  }
  func.func @transform_10(%arg0: i32) -> (i32, i32) {
    %c0_i32 = arith.constant 0 : i32
    %c0_i32_0 = arith.constant 0 : i32
    %c0_i32_1 = arith.constant 0 : i32
    return %c0_i32, %c0_i32_0 : i32, i32
  }
  func.func @transform_11(%arg0: i32) -> (i32, i32) {
    %c0_i32 = arith.constant 0 : i32
    %c0_i32_0 = arith.constant 0 : i32
    %c0_i32_1 = arith.constant 0 : i32
    return %c0_i32, %c0_i32_0 : i32, i32
  }
  func.func @transform_12(%arg0: i32) -> (i32, i32) {
    %c0_i32 = arith.constant 0 : i32
    %c0_i32_0 = arith.constant 0 : i32
    %c0_i32_1 = arith.constant 0 : i32
    return %c0_i32, %c0_i32_0 : i32, i32
  }
  func.func @transform_13(%arg0: i32) -> (i32, i32) {
    %c0_i32 = arith.constant 0 : i32
    %c0_i32_0 = arith.constant 0 : i32
    %c0_i32_1 = arith.constant 0 : i32
    return %c0_i32, %c0_i32_0 : i32, i32
  }
  func.func @transform_14(%arg0: i32) -> (i32, i32) {
    %c0_i32 = arith.constant 0 : i32
    %c0_i32_0 = arith.constant 0 : i32
    %c0_i32_1 = arith.constant 0 : i32
    return %c0_i32, %c0_i32_0 : i32, i32
  }
  func.func @transform_15(%arg0: i32) -> (i32, i32) {
    %c0_i32 = arith.constant 0 : i32
    %c0_i32_0 = arith.constant 0 : i32
    %c0_i32_1 = arith.constant 0 : i32
    return %c0_i32, %c0_i32_0 : i32, i32
  }
  func.func @transform_16(%arg0: i32) -> (i32, i32, i32) {
    %c0_i32 = arith.constant 0 : i32
    %c0_i32_0 = arith.constant 0 : i32
    %c0_i32_1 = arith.constant 0 : i32
    return %arg0, %c0_i32, %c0_i32_0 : i32, i32, i32
  }
}

</mosaic_0001>

<bundles_post_ra>
// kernel: tpu_custom_call.1
= control target key start
LH: loop header
LB: loop body
LE: loop exit
PB: predicated region body
PF: predicated region fallthrough
CT: control target
= control target key end

     0   :  { %s3182_s0 = inlined_call_operand.vmem [shape: f32[2,16,256], index: 0, kind: input, shape index: {}]   ;;  %s3183_s1 = inlined_call_operand.vmem [shape: f32[16,16], index: 1, kind: input, shape index: {}]   ;;  %s3184_s2 = inlined_call_operand.vmem [shape: f32[16,1], index: 2, kind: input, shape index: {}]   ;;  %s3185_s3 = inlined_call_operand.vmem [shape: f32[16,9], index: 3, kind: input, shape index: {}]   ;;  %s3186_s4 = inlined_call_operand.vmem [shape: f32[16,1], index: 4, kind: input, shape index: {}]   ;;  %s3187_s5 = inlined_call_operand.vmem [shape: f32[12,16], index: 5, kind: input, shape index: {}]   ;;  %s3188_s6 = inlined_call_operand.hbm [shape: f32[12,16], index: 6, kind: input, shape index: {}]   ;;  %s3189_s7 = inlined_call_operand.vmem [shape: f32[12,1], index: 7, kind: input, shape index: {}]   ;;  %s3190_s8 = inlined_call_operand.hbm [shape: f32[12,9], index: 8, kind: input, shape index: {}]   ;;  %s3191_s9 = inlined_call_operand.vmem [shape: f32[12,1], index: 9, kind: input, shape index: {}]   ;;  %s3192_s10 = inlined_call_operand.vmem [shape: f32[16,9], index: 10, kind: input, shape index: {}]   ;;  %s3193_s11 = inlined_call_operand.vmem [shape: f32[16,1], index: 11, kind: input, shape index: {}]   ;;  %s3194_s12 = inlined_call_operand.hbm [shape: f32[12,16], index: 12, kind: input, shape index: {}]   ;;  %s3195_s13 = inlined_call_operand.vmem [shape: f32[12,1], index: 13, kind: input, shape index: {}]   ;;  %s3196_s14 = inlined_call_operand.hbm [shape: f32[12,16], index: 14, kind: input, shape index: {}]   ;;  %s3197_s15 = inlined_call_operand.vmem [shape: f32[12,1], index: 15, kind: input, shape index: {}]   ;;  %s3198_s16 = inlined_call_operand.hbm [shape: f32[2,24,256], index: 16, kind: output, shape index: {}]  }
   0x1   :  { %3227 = sst [smem:[#allocation22_spill]] %s3182_s0 }
   0x2   :  { %3228 = sst [smem:[#allocation23_spill]] %s3188_s6 }
   0x3   :  { %3229 = sst [smem:[#allocation24_spill]] %s3190_s8 }
   0x4   :  { %3230 = sst [smem:[#allocation25_spill]] %s3195_s13 }
   0x5   :  { %3231 = sst [smem:[#allocation26_spill]] %s3198_s16 }
   0x6   :  { %21 = vsyncpa [#allocation3], 0 }
   0x7   :  { %22 = vsyncpa [#allocation6], 0 }
   0x8   :  { %23 = vsyncpa [#allocation9], 0 }
   0x9   :  { %24 = vsyncpa [#allocation4], 0 }
   0xa   :  { %26 = vsyncpa [#allocation4 + $0x1], 0  ;;  %s2299_s21 = smov 0   ;;  %s2301_s22 = smov 0  }
   0xb   :  { %s2303_s23 = smov 0   ;;  %s2305_s24 = smov 0  }
   0xc LB: > { %3232 = sst [smem:[#allocation15_spill]] %s2180_s21  ;;  %s2320_s25 = sadd.s32 4294967295, %s2192_s24   ;;  %s2192_s24 = sphi %s2305_s24, %s3269_s24   ;;  %s2188_s23 = sphi %s2303_s23, %s3271_s23   ;;  %s2184_s22 = sphi %s2301_s22, %s3273_s22   ;;  %s2180_s21 = sphi %s2299_s21, %s3272_s21  }
   0xd   : > { %3233 = sst [smem:[#allocation16_spill]] %s2188_s23  ;;  %s1799_s26 = sadd.s32 4294967294, %s2192_s24  }
   0xe   : > { %3234 = sst [smem:[#allocation17_spill]] %s2192_s24  ;;  %s2324_s27 = sadd.s32 1, %s2192_s24  }
   0xf   : > { %3235 = sst [smem:[#allocation18_spill]] %s2324_s27  ;;  %s380_s28 = sadd.s32 1, %s2188_s23 }
  0x10   : > { %s377_s29 = ssub.s32 %s2192_s24, %s2324_s27  ;;  %p390_p0 = scmp.ne.s32.totalorder %s2188_s23, %s2184_s22 }
  0x11   : > { %p378_p1 = scmp.eq.s32.totalorder %s377_s29, 0  ;;  %p391_p2 = scmp.eq.s32.totalorder %s2320_s25, 1 }
  0x12   : > { %p396_p3 = scmp.ne.s32.totalorder %s2184_s22, %s2180_s21  ;;  %p397_p4 = scmp.eq.s32.totalorder %s1799_s26, 1 }
  0x13   : > { %s2335_s30 = scalar_select %p378_p1, %s2188_s23, %s380_s28  }
  0x14   : > { %p2337_p5 = por %p391_p2, %p390_p0  ;;  %p2341_p6 = por %p397_p4, %p396_p3 }
  0x15   : > { %3236 = sst [smem:[#allocation19_spill]] %s2335_s30  ;;  %p1800_p7 = scmp.ge.s32.totalorder %s2192_s24, 1 }
  0x16   : > { %s3237_s0 = scalar_select %p2337_p5, 1, 0 }
  0x17   : > { %s3239_s17 = scalar_select %p2341_p6, 1, 0 }
  0x18   : > { %3238 = sst [smem:[#allocation20_spill]] %s3237_s0  ;;  %p404_p8 = scmp.lt.s32.totalorder %s2192_s24, 3 }
  0x19   : > { %3240 = sst [smem:[#allocation21_spill]] %s3239_s17  ;;  %p1878_p9 = scmp.eq.s32.totalorder %s2320_s25, 0 }
  0x1a   : > { %p2348_p10 = pnand %p1800_p7, %p404_p8  ;;  %s3242_s8 = sld [smem:[#allocation24_spill]] }
  0x1b   : > { %s3243_s6 = sld [smem:[#allocation23_spill]]  ;;  %s2194_s27 = smov [#allocation5]  }
  0x1c   : > { %p1861_p11 = pneg %p2348_p10  ;;  %s449_s17 = sshll.u32 %s2194_s27, 4  ;;  %s450_s17 = int_to_ptr.vmem [resolvable:$true] %s449_s17 }
  0x1d   : > { %s2195_s19 = smov 128   ;;  %s2196_s20 = smov 8  }
  0x1e   : > { %p2362_p12 = pnand %p1878_p9, %p1861_p11  ;;  %s470_s21 = sshll.u32 %s3194_s12, 4  ;;  %s471_s21 = int_to_ptr.hbm [resolvable:$true] %s470_s21 }
  0x1f   : > { %s487_s0 = sshll.u32 %s3196_s14, 4  ;;  %s2198_s16 = smov [#allocation7]   ;;  %s488_s0 = int_to_ptr.hbm [resolvable:$true] %s487_s0 }
  0x20   : > { %s447_s26 = sshll.u32 %s3242_s8, 4  ;;  %s2197_s8 = smov [#allocation2]   ;;  %s448_s26 = int_to_ptr.hbm [resolvable:$true] %s447_s26 }
  0x21   : > { %s430_s30 = sshll.u32 %s3243_s6, 4  ;;  %s432_s28 = sshll.u32 %s2197_s8, 4  ;;  %s431_s30 = int_to_ptr.hbm [resolvable:$true] %s430_s30  ;;  %s433_s28 = int_to_ptr.vmem [resolvable:$true] %s432_s28 }
  0x22   : > { %1867 = dma.hbm_to_vmem [thread:$0]  (!%p2362_p12), %s448_s26, 256, %s450_s17, [#allocation6], %s2195_s19, %s2195_s19, %s2196_s20  }
  0x23   : > { %1864 = dma.hbm_to_vmem [thread:$0]  (!%p2362_p12), %s431_s30, 256, %s433_s28, [#allocation3], %s2195_s19, %s2195_s19, %s2196_s20  }
  0x24   : > { %s472_s13 = sshll.u32 %s2198_s16, 4  ;;  %s2199_s17 = smov [#allocation8]   ;;  %s473_s13 = int_to_ptr.vmem [resolvable:$true] %s472_s13 }
  0x25   : > { %1870 = dma.hbm_to_vmem [thread:$0]  (!%p2362_p12), %s471_s21, 256, %s473_s13, [#allocation6], %s2195_s19, %s2195_s19, %s2196_s20  }
  0x26   : > { %s489_s8 = sshll.u32 %s2199_s17, 4  ;;  %516 = sbr.rel (%p2348_p10) target bundleno = 885 (0x375), region = 84  ;;  %s490_s8 = int_to_ptr.vmem [resolvable:$true] %s489_s8 }
  0x27   : > { %1873 = dma.hbm_to_vmem [thread:$0]  (!%p2362_p12), %s488_s0, 256, %s490_s8, [#allocation9], %s2195_s19, %s2195_s19, %s2196_s20  }
  0x2b   : > { %2163 = dma.done.wait (%p1878_p9), [#allocation3], 256  }
  0x2c   : > { %2165 = vsyncadd (%p1878_p9), [#allocation3], 4294967040 }
  0x2d   : > { %2167 = dma.done.wait (%p1878_p9), [#allocation6], 512  }
  0x2e   : > { %2169 = vsyncadd (%p1878_p9), [#allocation6], 4294966784 }
  0x2f   : > { %2171 = dma.done.wait (%p1878_p9), [#allocation9], 256  }
  0x30   : > { %2173 = vsyncadd (%p1878_p9), [#allocation9], 4294967040  ;;  %p582_p13 = scmp.lt.s32.totalorder %s2320_s25, 1  ;;  %v3215_v0 = vmov 3   ;;  %v3223_v1 = vmov 0   ;;  %s3245_s23 = sld [smem:[#allocation22_spill]] }
  0x31   : > { %1940 = vset.pattern.permute.xlu1 %v3215_v0  ;;  %1939 = vset.pattern.permute.xlu0 %v3223_v1  ;;  %v697_v2 = vld [vmem:[%s3185_s3] sm:$0xff]  ;;  %vm640_vm0 = vcmask 130048   ;;  %v627_v9 = vld [vmem:[%s3183_s1 + $0x8] sm:$0xff]  ;;  %v3211_v12 = vmov 4   ;;  %v3209_v13 = vmov 5   ;;  %v3217_v14 = vmov 7  }
  0x32   : > { %s583_s6 = scalar_select %p582_p13, %s2320_s25, 1  ;;  %1941 = vset.pattern.permute.xlu2 %v3215_v0  ;;  %v628_v3 = vld [vmem:[%s3184_s2] sm:$0xff]  ;;  %745 = vperm.xlu1 %1940, %v697_v2   ;;  %v629_v10 = vld [vmem:[%s3184_s2 + $0x8] sm:$0xff]  ;;  %v3225_v15 = vmov 1   ;;  %v3221_v16 = vmov 2   ;;  %v3219_v17 = vmov 6  }
  0x33   : > { %632 = vperm.xlu0 %1939, %v628_v3   ;;  %v626_v8 = vld [vmem:[%s3183_s1] sm:$0xff]  ;;  %v698_v11 = vld [vmem:[%s3185_s3 + $0x8] sm:$0xff]  ;;  %v3213_v18 = vmov 8   ;;  %v2455_v19 = vld [vmem:[#allocation5] sm:$0xff]  ;;  %s2209_s0 = smov 127   ;;  %s2210_s18 = smov 1  }
  0x34   : > { %s1836_s13 = sshll.u32 %s583_s6, 5  ;;  %750 = vperm.xlu2 %1941, %v698_v11   ;;  %v1053_v20 = vld [vmem:[%s3189_s7] sm:$0xff]  ;;  %v700_v21 = vld [vmem:[%s3186_s4 + $0x8] sm:$0xff]  ;;  %v2473_v23 = vld [vmem:[#allocation5 + $0x8] sm:$0xf]  ;;  %s2211_s20 = smov 112  }
  0x35   : > { %v1054_v22 = vld [vmem:[%s3189_s7 + $0x8] sm:$0xf]  ;;  %v699_v56 = vld [vmem:[%s3186_s4] sm:$0xff]  ;;  %s2212_s28 = smov 16   ;;  %s3264_s29 = sld [smem:[#allocation26_spill]]  ;;  %vm1665_vm11 = vcmask 1043456  }
  0x36   : > { %s586_s24 = scalar_lea.vmem %s3245_s23, %s1836_s13  ;;  %s3263_s13 = sld [smem:[#allocation25_spill]] }
  0x37   : > { %v2408_v4 = vld [vmem:[%s586_s24 + $0x10] sm:$0xff]  ;;  %v2410_v5 = vld [vmem:[%s586_s24 + $0x18] sm:$0xff]  ;;  %v2412_v6 = vld [vmem:[%s586_s24] sm:$0xff] }
  0x38   : > { %661 = vmatpush.msra.mxu0 %v2408_v4  ;;  %1837 = vmatpush.msra.mxu2 %v2408_v4  ;;  %v2416_v7 = vld [vmem:[%s586_s24 + $0x8] sm:$0xff] }
  0x39   : > { %684 = vmatpush.msra.mxu1 %v2410_v5  ;;  %1839 = vmatpush.msra.mxu3 %v2410_v5 }
  0x3a   : > { %662 = vmatpush.msra.mxu0 %v2412_v6  ;;  %1838 = vmatpush.msra.mxu2 %v2412_v6 }
  0x3b   : > { %685 = vmatpush.msra.mxu1 %v2416_v7  ;;  %1840 = vmatpush.msra.mxu3 %v2416_v7 }
  0x3c   : > { %1813 = vmatmul.msk.f32.vlgmr.msra.gmra.mxu0 %vm640_vm0, %v626_v8  ;;  %1814 = vmatmul.msk.f32.vlgmr.msra.gmra.mxu2 %vm640_vm0, %v627_v9 }
  0x3d   : > { %1815 = vmatmul.msk.f32.vlgmr.msra.gmra.mxu1 %vm640_vm0, %v626_v8  ;;  %1816 = vmatmul.msk.f32.vlgmr.msra.gmra.mxu3 %vm640_vm0, %v627_v9 }
  0x3e   : > { %1942 = vset.pattern.permute.xlu1 %v3211_v12  ;;  %637 = vperm.xlu0 %1939, %v629_v10  }
  0x3f   : > { %762 = vperm.xlu1 %1942, %v698_v11   ;;  %1943 = vset.pattern.permute.xlu2 %v3209_v13 }
  0x40   : > { %774 = vperm.xlu2 %1943, %v697_v2  }
  0x46   : > { %1952 = vset.pattern.permute.xlu0 %v3217_v14 }
  0x47   : > { %1944 = vset.pattern.permute.xlu1 %v3209_v13  ;;  %871 = vperm.xlu0 %1952, %v697_v2  }
  0x48   : > { %778 = vperm.xlu1 %1944, %v698_v11   ;;  %1945 = vset.pattern.permute.xlu2 %v3223_v1 }
  0x49   : > { %790 = vperm.xlu2 %1945, %v697_v2  }
  0x4f   : > { %1953 = vset.pattern.permute.xlu0 %v3211_v12 }
  0x50   : > { %1946 = vset.pattern.permute.xlu1 %v3225_v15  ;;  %758 = vperm.xlu0 %1953, %v697_v2  }
  0x51   : > { %802 = vperm.xlu1 %1946, %v697_v2   ;;  %1947 = vset.pattern.permute.xlu2 %v3225_v15 }
  0x52   : > { %806 = vperm.xlu2 %1947, %v698_v11  }
  0x58   : > { %1120 = vperm.xlu0 %1953, %v2455_v19  }
  0x59   : > { %1948 = vset.pattern.permute.xlu1 %v3221_v16 }
  0x5a   : > { %818 = vperm.xlu1 %1948, %v697_v2   ;;  %1949 = vset.pattern.permute.xlu2 %v3221_v16 }
  0x5b   : > { %822 = vperm.xlu2 %1949, %v698_v11  }
  0x60   : > { %1961 = vset.pattern.permute.xlu0 %v3223_v1 }
  0x61   : > { %794 = vperm.xlu0 %1961, %v698_v11  }
  0x62   : > { %1950 = vset.pattern.permute.xlu1 %v3219_v17 }
  0x63   : > { %859 = vperm.xlu1 %1950, %v697_v2   ;;  %1951 = vset.pattern.permute.xlu2 %v3219_v17 }
  0x64   : > { %863 = vperm.xlu2 %1951, %v698_v11  }
  0x6b   : > { %1954 = vset.pattern.permute.xlu1 %v3217_v14 }
  0x6c   : > { %875 = vperm.xlu1 %1954, %v698_v11   ;;  %1955 = vset.pattern.permute.xlu2 %v3213_v18 }
  0x6d   : > { %887 = vperm.xlu2 %1955, %v697_v2  }
  0x74   : > { %1956 = vset.pattern.permute.xlu1 %v3213_v18 }
  0x75   : > { %891 = vperm.xlu1 %1956, %v698_v11   ;;  %1958 = vset.pattern.permute.xlu2 %v3223_v1 }
  0x76   : > { %1057 = vperm.xlu2 %1958, %v1053_v20   ;;  %v591_v20 = vlaneseq }
  0x7d   : > { %1957 = vset.pattern.permute.xlu1 %v3223_v1 }
  0x7e   : > { %934 = vperm.xlu1 %1957, %v700_v21   ;;  %1960 = vset.pattern.permute.xlu2 %v3215_v0  ;;  %v2582_v21 = vand.u32 127, %v591_v20 }
  0x7f   : > { %1112 = vperm.xlu2 %1960, %v2473_v23  }
  0x80   : > { %vm730_vm1 = vcmp.lt.s32.totalorder %v2582_v21, 127  ;;  %vm709_vm2 = vcmp.lt.s32.totalorder %v2582_v21, 1  ;;  %vm841_vm7 = vcmp.lt.s32.totalorder %v2582_v21, 16  ;;  %vm622_vm8 = vcmp.ge.s32.totalorder %v2582_v21, 16 }
  0x81   : > { %vm910_vm9 = vcmp.lt.s32.totalorder %v2582_v21, 112 }
  0x86   : > { %1062 = vperm.xlu1 %1957, %v1054_v22  }
  0x87   : > { %1963 = vset.pattern.permute.xlu2 %v3209_v13 }
  0x8e   : > { %1959 = vset.pattern.permute.xlu1 %v3215_v0  ;;  %v2478_v24 = vpop.permute.xlu2 %750 }
  0x8f   : > { %1107 = vperm.xlu1 %1959, %v2455_v19  }
  0x97   : > { %1962 = vset.pattern.permute.xlu1 %v3211_v12 }
  0x9a   : > { %v2482_v27 = vpop.permute.xlu2 %774 }
  0xa3   : > { %v2484_v30 = vpop.permute.xlu2 %790 }
  0xa4   : > { %v2480_v26 = vpop.permute.xlu1 %745 }
  0xa5   : > { %v633_v25 = vpop.permute.xlu0 %632 }
  0xac   : > { %v807_v43 = vpop.permute.xlu2 %806 }
  0xb0   : > { %v638_v28 = vpop.permute.xlu0 %637 }
  0xb1   : > { %v763_v29 = vpop.permute.xlu1 %762 }
  0xb5   : > { %v2561_v61 = vpop.permute.xlu2 %822 }
  0xb9   : > { %v664_v31 = vpop.f32.mrf.mxu0  ;;  %v2486_v34 = vpop.permute.xlu0 %871 }
  0xba   : > { %v665_v32 = vadd.f32 %v664_v31, %v633_v25  ;;  %v687_v33 = vpop.f32.mrf.mxu1  ;;  %v2488_v36 = vpop.permute.xlu1 %778  ;;  %v598_v31 = vand.u32 15, %v2582_v21 }
  0xbb   : > { %v688_v35 = vadd.f32 %v687_v33, %v633_v25 }
  0xbc   : > { %v2490_v37 = vmax.f32 %v665_v32, 0.0  ;;  %vm2593_vm3 = vcmp.le.s32.totalorder %v598_v31, 14  ;;  %vm2597_vm4 = vcmp.ge.s32.totalorder %v598_v31, 1 }
  0xbd   : > { %v2492_v38 = vmax.f32 %v688_v35, 0.0 }
  0xbe   : > { %722 = vrot.lane.b32.xlu0 %v2490_v37, %s2209_s0  ;;  %701 = vrot.lane.b32.xlu1 %v2490_v37, %s2210_s18  ;;  %v2566_v62 = vpop.permute.xlu2 %863 }
  0xbf   : > { %705 = vrot.lane.b32.xlu2 %v2492_v38, %s2210_s18  ;;  %v667_v39 = vpop.f32.mrf.mxu2 }
  0xc0   : > { %v668_v40 = vadd.f32 %v667_v39, %v638_v28  ;;  %v690_v41 = vpop.f32.mrf.mxu3 }
  0xc1   : > { %v691_v42 = vadd.f32 %v690_v41, %v638_v28 }
  0xc2   : > { %v695_v44 = vmax.f32 %v668_v40, 0.0  ;;  %v759_v46 = vpop.permute.xlu0 %758 }
  0xc3   : > { %v2500_v45 = vmax.f32 %v691_v42, 0.0  ;;  %v2505_v48 = vmul.f32 %v759_v46, %v2490_v37  ;;  %v2508_v49 = vmul.f32 %v759_v46, %v2492_v38  ;;  %v803_v50 = vpop.permute.xlu1 %802 }
  0xc4   : > { %v2502_v47 = vmul.f32 %v807_v43, %v695_v44  ;;  %1021 = vmatpush.msrb.mxu0 %v695_v44  ;;  %v2510_v51 = vmul.f32 %v763_v29, %v695_v44  ;;  %v2517_v53 = vmul.f32 %v803_v50, %v2490_v37  ;;  %v2520_v54 = vmul.f32 %v803_v50, %v2492_v38 }
  0xc5   : > { %v2513_v52 = vmul.f32 %v807_v43, %v2500_v45  ;;  %1044 = vmatpush.msrb.mxu1 %v2500_v45  ;;  %v2523_v55 = vmul.f32 %v763_v29, %v2500_v45  ;;  %v2587_v29 = vadd.s32 128, %v2582_v21 }
  0xc6   : > { %728 = vrot.lane.b32.xlu0 %v2500_v45, %s2209_s0  ;;  %703 = vrot.lane.b32.xlu1 %v695_v44, %s2210_s18 }
  0xc7   : > { %726 = vrot.lane.b32.xlu2 %v2492_v38, %s2209_s0  ;;  %1045 = vmatpush.msrb.mxu1 %v2492_v38  ;;  %v2568_v63 = vpop.permute.xlu2 %887  ;;  %v605_v32 = vand.u32 15, %v2587_v29  ;;  %vm625_vm10 = vcmp.lt.s32.totalorder %v2587_v29, 240 }
  0xc8   : > { %1022 = vmatpush.msrb.mxu0 %v2490_v37 }
  0xc9   : > { %vm2601_vm5 = vcmp.ge.s32.totalorder %v605_v32, 1  ;;  %vm2605_vm6 = vcmp.le.s32.totalorder %v605_v32, 14 }
  0xca   : > { %v2578_v10 = vpop.permute.xlu0 %1120 }
  0xcc   : > { %v2535_v57 = vpop.permute.xlu1 %818 }
  0xce   : > { %929 = vperm.xlu0 %1961, %v699_v56   ;;  %724 = vrot.lane.b32.xlu1 %v695_v44, %s2209_s0 }
  0xcf   : > { %707 = vrot.lane.b32.xlu2 %v2500_v45, %s2210_s18 }
  0xd0   : > { %v2572_v3 = vpop.permute.xlu2 %1057 }
  0xd3   : > { %v795_v28 = vpop.permute.xlu0 %794 }
  0xd5   : > { %v2541_v58 = vpop.permute.xlu1 %859 }
  0xd6   : > { %1156 = vperm.xlu0 %1961, %v2473_v23   ;;  %1124 = vperm.xlu1 %1962, %v2473_v23  }
  0xd7   : > { %1136 = vperm.xlu2 %1963, %v2455_v19  }
  0xd9   : > { %v2576_v9 = vpop.permute.xlu2 %1112 }
  0xde   : > { %1964 = vset.pattern.permute.xlu1 %v3209_v13  ;;  %v2546_v59 = vpop.permute.xlu1 %875 }
  0xdf   : > { %1965 = vset.pattern.permute.xlu2 %v3223_v1  ;;  %1140 = vperm.xlu1 %1964, %v2473_v23   ;;  %v2551_v60 = vmul.f32 %v2546_v59, %v695_v44 }
  0xe0   : > { %1152 = vperm.xlu2 %1965, %v2455_v19  }
  0xe7   : > { %1966 = vset.pattern.permute.xlu1 %v3225_v15  ;;  %v2570_v2 = vpop.permute.xlu1 %891 }
  0xe8   : > { %1967 = vset.pattern.permute.xlu2 %v3225_v15  ;;  %1164 = vperm.xlu1 %1966, %v2455_v19  }
  0xe9   : > { %1168 = vperm.xlu2 %1967, %v2473_v23  }
  0xf0   : > { %1968 = vset.pattern.permute.xlu1 %v3221_v16  ;;  %v2574_v8 = vpop.permute.xlu1 %934 }
  0xf1   : > { %1969 = vset.pattern.permute.xlu2 %v3221_v16  ;;  %1180 = vperm.xlu1 %1968, %v2455_v19  }
  0xf2   : > { %1184 = vperm.xlu2 %1969, %v2473_v23  }
  0xf8   : > { %v2580_v11 = vpop.permute.xlu1 %1062 }
  0xf9   : > { %1970 = vset.pattern.permute.xlu1 %v3219_v17 }
  0xfa   : > { %1971 = vset.pattern.permute.xlu2 %v3219_v17 }
 0x101   : > { %v2584_v25 = vpop.permute.xlu1 %1107 }
 0x119   : > { %v706_v22 = vpop.permute.xlu2 %705 }
 0x121   : > { %v727_v33 = vpop.permute.xlu2 %726 }
 0x129   : > { %v708_v16 = vpop.permute.xlu2 %707 }
 0x130   : > { %v723_v42 = vpop.permute.xlu0 %722  ;;  %v702_v43 = vpop.permute.xlu1 %701 }
 0x131   : > { %v731_v44 = vsel %vm730_vm1, %v723_v42, %v727_v33  ;;  %v733_v46 = vsel %vm730_vm1, %v727_v33, %v723_v42  ;;  %v710_v50 = vsel %vm709_vm2, %v702_v43, %v706_v22  ;;  %v712_v56 = vsel %vm709_vm2, %v706_v22, %v702_v43 }
 0x132   : > { %v739_v20 = vsel %vm2593_vm3, %v731_v44, 0.0  ;;  %v718_v31 = vsel %vm2597_vm4, %v712_v56, 0.0  ;;  %v719_v32 = vsel %vm2601_vm5, %v710_v50, 0.0  ;;  %v740_v13 = vsel %vm2605_vm6, %v733_v46, 0.0 }
 0x133   : > { %v879_v33 = vmul.f32 %v2486_v34, %v2492_v38  ;;  %v753_v42 = vmul.f32 %v2480_v26, %v718_v31  ;;  %v754_v12 = vmul.f32 %v2480_v26, %v719_v32  ;;  %v781_v22 = vmul.f32 %v2482_v27, %v739_v20 }
 0x134   : > { %v797_v43 = vmul.f32 %v2484_v30, %v718_v31  ;;  %v798_v44 = vmul.f32 %v2484_v30, %v719_v32  ;;  %v867_v56 = vmul.f32 %v2541_v58, %v719_v32  ;;  %v782_v50 = vmul.f32 %v2482_v27, %v740_v13 }
 0x135   : > { %v826_v18 = vmul.f32 %v2535_v57, %v740_v13  ;;  %v769_v46 = vadd.f32 %v2505_v48, %v753_v42  ;;  %v770_v38 = vadd.f32 %v2508_v49, %v754_v12  ;;  %v895_v0 = vmul.f32 %v2568_v63, %v740_v13 }
 0x136   : > { %v883_v14 = vadd.f32 %v879_v33, %v867_v56  ;;  %v814_v26 = vadd.f32 %v2520_v54, %v798_v44  ;;  %v813_v17 = vadd.f32 %v2517_v53, %v797_v43  ;;  %v825_v30 = vmul.f32 %v2535_v57, %v739_v20 }
 0x137   : > { %v866_v32 = vmul.f32 %v2541_v58, %v718_v31  ;;  %v2642_v27 = vadd.f32 %v782_v50, %v770_v38  ;;  %v2644_v15 = vadd.f32 %v781_v22, %v769_v46  ;;  %v878_v58 = vmul.f32 %v2486_v34, %v2490_v37 }
 0x138   : > { %v704_v1 = vpop.permute.xlu1 %703  ;;  %v899_v48 = vadd.f32 %v895_v0, %v883_v14  ;;  %v830_v49 = vadd.f32 %v826_v18, %v814_v26  ;;  %v829_v57 = vadd.f32 %v825_v30, %v813_v17  ;;  %v894_v18 = vmul.f32 %v2568_v63, %v739_v20  ;;  %v729_v34 = vpop.permute.xlu0 %728 }
 0x139   : > { %v711_v12 = vsel %vm709_vm2, %v704_v1, %v708_v16  ;;  %v713_v13 = vsel %vm709_vm2, %v708_v16, %v704_v1  ;;  %v882_v1 = vadd.f32 %v878_v58, %v866_v32 }
 0x13a   : > { %v720_v53 = vsel %vm2597_vm4, %v713_v13, 0.0  ;;  %v721_v54 = vsel %vm2601_vm5, %v711_v12, 0.0  ;;  %906 = vrot.lane.b32.xlu1 %v899_v48, %s2211_s20  ;;  %837 = vrot.lane.b32.xlu2 %v830_v49, %s2212_s28  ;;  %v3256_v49 = vmov 2  }
 0x13b   : > { %v755_v31 = vmul.f32 %v2478_v24, %v720_v53  ;;  %v756_v33 = vmul.f32 %v2478_v24, %v721_v54  ;;  %833 = vrot.lane.b32.xlu0 %v829_v57, %s2212_s28  ;;  %v799_v16 = vmul.f32 %v795_v28, %v720_v53  ;;  %v800_v17 = vmul.f32 %v795_v28, %v721_v54 }
 0x13c   : > { %v898_v22 = vadd.f32 %v894_v18, %v882_v1  ;;  %v869_v50 = vmul.f32 %v2566_v62, %v721_v54  ;;  %v3258_v57 = vmov 7  }
 0x13d   : > { %v771_v0 = vadd.f32 %v2510_v51, %v755_v31  ;;  %v772_v14 = vadd.f32 %v2523_v55, %v756_v33  ;;  %v815_v55 = vadd.f32 %v2502_v47, %v799_v16  ;;  %v816_v28 = vadd.f32 %v2513_v52, %v800_v17 }
 0x13e   : > { %v881_v47 = vmul.f32 %v2546_v59, %v2500_v45  ;;  %v3254_v45 = vmov 1   ;;  %v1294_v59 = vld [vmem:[%s3192_s10 + $0x8] sm:$0xff]  ;;  %v3259_v31 = vmov 3   ;;  %v3261_v17 = vmov 4  }
 0x140   : > { %v725_v37 = vpop.permute.xlu1 %724 }
 0x141   : > { %v732_v24 = vsel %vm730_vm1, %v725_v37, %v729_v34  ;;  %v734_v42 = vsel %vm730_vm1, %v729_v34, %v725_v37  ;;  %v930_v37 = vpop.permute.xlu0 %929 }
 0x142   : > { %v741_v43 = vsel %vm2593_vm3, %v732_v24, 0.0  ;;  %v742_v51 = vsel %vm2605_vm6, %v734_v42, 0.0  ;;  %902 = vrot.lane.b32.xlu2 %v898_v22, %s2211_s20  ;;  %v3262_v24 = vmov 5  }
 0x143   : > { %v783_v63 = vmul.f32 %v2488_v36, %v741_v43  ;;  %v784_v20 = vmul.f32 %v2488_v36, %v742_v51  ;;  %v827_v44 = vmul.f32 %v2561_v61, %v741_v43  ;;  %v828_v56 = vmul.f32 %v2561_v61, %v742_v51 }
 0x144   : > { %v897_v52 = vmul.f32 %v2570_v2, %v742_v51  ;;  %v868_v36 = vmul.f32 %v2566_v62, %v720_v53  ;;  %v885_v61 = vadd.f32 %v881_v47, %v869_v50  ;;  %v896_v32 = vmul.f32 %v2570_v2, %v741_v43  ;;  %v2718_v62 = vpop.permute.xlu2 %1136 }
 0x145   : > { %v831_v46 = vadd.f32 %v827_v44, %v815_v55  ;;  %v832_v38 = vadd.f32 %v828_v56, %v816_v28  ;;  %v2680_v26 = vadd.f32 %v783_v63, %v771_v0  ;;  %v2682_v30 = vadd.f32 %v784_v20, %v772_v14  ;;  %v945_v63 = vld [vmem:[%s3187_s5] sm:$0xff] }
 0x146   : > { %v901_v12 = vadd.f32 %v897_v52, %v885_v61  ;;  %v884_v13 = vadd.f32 %v2551_v60, %v868_v36  ;;  %v1293_v60 = vld [vmem:[%s3192_s10] sm:$0xff]  ;;  %v3255_v2 = vmov 0   ;;  %v3257_v53 = vmov 6   ;;  %1821 = vmatmul.msk.f32.vlgmr.msrb.gmra.mxu0 %vm640_vm0, %v945_v63  ;;  %1823 = vmatmul.msk.f32.vlgmr.msrb.gmra.mxu1 %vm640_vm0, %v945_v63  ;;  %v946_v36 = vld [vmem:[%s3187_s5 + $0x8] sm:$0xf] }
 0x147   : > { %835 = vrot.lane.b32.xlu1 %v831_v46, %s2212_s28  ;;  %839 = vrot.lane.b32.xlu0 %v832_v38, %s2212_s28  ;;  %v3260_v0 = vmov 8  }
 0x148   : > { %v900_v48 = vadd.f32 %v896_v32, %v884_v13  ;;  %v2734_v33 = vpop.permute.xlu1 %1124 }
 0x149   : > { %v2752_v43 = vpop.permute.xlu0 %1156 }
 0x14a   : > { %908 = vrot.lane.b32.xlu2 %v901_v12, %s2211_s20 }
 0x14c   : > { %v2725_v54 = vpop.permute.xlu2 %1152 }
 0x14e   : > { %1822 = vmatmul.msk.f32.gmra.mxu0 %vm640_vm0, %v946_v36  ;;  %1824 = vmatmul.msk.f32.gmra.mxu1 %vm640_vm0, %v946_v36 }
 0x14f   : > { %1216 = vperm.xlu1 %1970, %v2455_v19   ;;  %904 = vrot.lane.b32.xlu0 %v900_v48, %s2211_s20 }
 0x151   : > { %v2741_v14 = vpop.permute.xlu1 %1140 }
 0x152   : > { %1220 = vperm.xlu2 %1971, %v2473_v23  }
 0x154   : > { %v2730_v58 = vpop.permute.xlu2 %1168 }
 0x157   : > { %1303 = vrot.lane.b32.xlu1 %v2410_v5, %s2210_s18  ;;  %1299 = vrot.lane.b32.xlu0 %v2408_v4, %s2210_s18 }
 0x158   : > { %1972 = vset.pattern.permute.xlu1 %v3254_v45 }
 0x15a   : > { %1297 = vrot.lane.b32.xlu2 %v2412_v6, %s2210_s18  ;;  %v2746_v18 = vpop.permute.xlu1 %1164 }
 0x15b   : > { %1974 = vset.pattern.permute.xlu2 %v3254_v45 }
 0x15c   : > { %v2737_v1 = vpop.permute.xlu2 %1184 }
 0x15f   : > { %1315 = vrot.lane.b32.xlu1 %v2408_v4, %s2209_s0  ;;  %1301 = vrot.lane.b32.xlu0 %v2416_v7, %s2210_s18 }
 0x162   : > { %1319 = vrot.lane.b32.xlu2 %v2410_v5, %s2209_s0 }
 0x163   : > { %v2750_v22 = vpop.permute.xlu1 %1180 }
 0x167   : > { %1392 = vperm.xlu1 %1972, %v1294_v59   ;;  %1380 = vperm.xlu0 %1961, %v1294_v59  }
 0x16a   : > { %1313 = vrot.lane.b32.xlu2 %v2412_v6, %s2209_s0 }
 0x16f   : > { %1973 = vset.pattern.permute.xlu1 %v3255_v2  ;;  %1317 = vrot.lane.b32.xlu0 %v2416_v7, %s2209_s0 }
 0x170   : > { %1376 = vperm.xlu1 %1973, %v1293_v60   ;;  %1975 = vset.pattern.permute.xlu0 %v3256_v49 }
 0x172   : > { %1388 = vperm.xlu2 %1974, %v1293_v60  }
 0x177   : > { %1408 = vperm.xlu0 %1975, %v1294_v59  }
 0x178   : > { %1976 = vset.pattern.permute.xlu1 %v3257_v53 }
 0x179   : > { %1444 = vperm.xlu1 %1976, %v1294_v59  }
 0x17a   : > { %1977 = vset.pattern.permute.xlu2 %v3258_v57 }
 0x17b   : > { %1456 = vperm.xlu2 %1977, %v1294_v59  }
 0x17f   : > { %1980 = vset.pattern.permute.xlu0 %v3258_v57 }
 0x180   : > { %1452 = vperm.xlu0 %1980, %v1293_v60  }
 0x181   : > { %1978 = vset.pattern.permute.xlu1 %v3256_v49 }
 0x182   : > { %1404 = vperm.xlu1 %1978, %v1293_v60  }
 0x183   : > { %1979 = vset.pattern.permute.xlu2 %v3257_v53 }
 0x184   : > { %1440 = vperm.xlu2 %1979, %v1293_v60  }
 0x188   : > { %1985 = vset.pattern.permute.xlu0 %v3259_v31 }
 0x189   : > { %1331 = vperm.xlu0 %1985, %v1293_v60  }
 0x18a   : > { %1981 = vset.pattern.permute.xlu1 %v3260_v0 }
 0x18b   : > { %1472 = vperm.xlu1 %1981, %v1294_v59  }
 0x18c   : > { %1982 = vset.pattern.permute.xlu2 %v3260_v0 }
 0x18d   : > { %1468 = vperm.xlu2 %1982, %v1293_v60  }
 0x191   : > { %1991 = vset.pattern.permute.xlu0 %v3258_v57 }
 0x193   : > { %1983 = vset.pattern.permute.xlu1 %v3259_v31 }
 0x194   : > { %1336 = vperm.xlu1 %1983, %v1294_v59   ;;  %v838_v16 = vpop.permute.xlu2 %837 }
 0x195   : > { %1984 = vset.pattern.permute.xlu2 %v3261_v17 }
 0x196   : > { %1348 = vperm.xlu2 %1984, %v1294_v59  }
 0x19c   : > { %1986 = vset.pattern.permute.xlu1 %v3261_v17  ;;  %v903_v34 = vpop.permute.xlu2 %902 }
 0x19d   : > { %1344 = vperm.xlu1 %1986, %v1293_v60  }
 0x19e   : > { %1987 = vset.pattern.permute.xlu2 %v3262_v24 }
 0x19f   : > { %1364 = vperm.xlu2 %1987, %v1294_v59  }
 0x1a4   : > { %v909_v42 = vpop.permute.xlu2 %908 }
 0x1a5   : > { %1988 = vset.pattern.permute.xlu1 %v3262_v24 }
 0x1a6   : > { %1360 = vperm.xlu1 %1988, %v1293_v60  }
 0x1a7   : > { %1990 = vset.pattern.permute.xlu2 %v3255_v2 }
 0x1ac   : > { %v2755_v51 = vpop.permute.xlu2 %1220  ;;  %v907_v55 = vpop.permute.xlu1 %906 }
 0x1ad   : > { %v834_v28 = vpop.permute.xlu0 %833  ;;  %v913_v52 = vsel %vm910_vm9, %v907_v55, %v903_v34  ;;  %v911_v59 = vsel %vm910_vm9, %v903_v34, %v907_v55 }
 0x1ae   : > { %1989 = vset.pattern.permute.xlu1 %v3255_v2  ;;  %v844_v44 = vsel %vm841_vm7, %v838_v16, %v834_v28  ;;  %v842_v38 = vsel %vm841_vm7, %v834_v28, %v838_v16  ;;  %v920_v48 = vsel %vm625_vm10, %v913_v52, 0.0 }
 0x1af   : > { %v850_v46 = vsel %vm622_vm8, %v844_v44, 0.0  ;;  %v855_v32 = vadd.f32 %v842_v38, %v2642_v27 }
 0x1b0   : > { %v854_v61 = vadd.f32 %v850_v46, %v2644_v15 }
 0x1b1   : > { %v924_v17 = vadd.f32 %v920_v48, %v855_v32 }
 0x1b2   : > { %v923_v53 = vadd.f32 %v911_v59, %v854_v61 }
 0x1b3   : > { %v938_v44 = vadd.f32 %v930_v37, %v924_v17 }
 0x1b4   : > { %v2764_v20 = vpop.permute.xlu2 %1297  ;;  %v937_v55 = vadd.f32 %v930_v37, %v923_v53 }
 0x1b5   : > { %v942_v52 = vmax.f32 %v938_v44, 0.0 }
 0x1b9   : > { %v836_v56 = vpop.permute.xlu1 %835  ;;  %v840_v50 = vpop.permute.xlu0 %839 }
 0x1ba   : > { %v845_v47 = vsel %vm841_vm7, %v840_v50, %v836_v56  ;;  %v843_v45 = vsel %vm841_vm7, %v836_v56, %v840_v50 }
 0x1bb   : > { %v852_v12 = vsel %vm622_vm8, %v845_v47, 0.0  ;;  %v857_v27 = vadd.f32 %v843_v45, %v2682_v30  ;;  %v941_v47 = vmax.f32 %v937_v55, 0.0 }
 0x1bc   : > { %v1320_v13 = vpop.permute.xlu2 %1319  ;;  %v856_v15 = vadd.f32 %v852_v12, %v2680_v26 }
 0x1c1   : > { %v2795_v60 = vpop.permute.xlu1 %1216  ;;  %v905_v49 = vpop.permute.xlu0 %904 }
 0x1c2   : > { %v912_v31 = vsel %vm910_vm9, %v905_v49, %v909_v42  ;;  %v914_v16 = vsel %vm910_vm9, %v909_v42, %v905_v49  ;;  %v947_v42 = vld [vmem:[#allocation2] sm:$0xff] }
 0x1c3   : > { %v922_v24 = vsel %vm625_vm10, %v914_v16, 0.0  ;;  %v925_v28 = vadd.f32 %v912_v31, %v856_v15 }
 0x1c4   : > { %v926_v34 = vadd.f32 %v922_v24, %v857_v27  ;;  %v1314_v50 = vpop.permute.xlu2 %1313 }
 0x1c5   : > { %v939_v26 = vadd.f32 %v2574_v8, %v925_v28 }
 0x1c6   : > { %v940_v63 = vadd.f32 %v2574_v8, %v926_v34  ;;  %v948_v8 = vld [vmem:[#allocation2 + $0x8] sm:$0xf] }
 0x1c7   : > { %v943_v56 = vmax.f32 %v939_v26, 0.0 }
 0x1c8   : > { %v944_v30 = vmax.f32 %v940_v63, 0.0 }
 0x1c9   : > { %v1304_v46 = vpop.permute.xlu1 %1303  ;;  %969 = vmatpush.msrb.mxu2 %v943_v56  ;;  %v1300_v38 = vpop.permute.xlu0 %1299 }
 0x1ca   : > { %992 = vmatpush.msrb.mxu3 %v944_v30  ;;  %v1306_v45 = vsel %vm709_vm2, %v1300_v38, %v1304_v46  ;;  %v1308_v59 = vsel %vm709_vm2, %v1304_v46, %v1300_v38 }
 0x1cb   : > { %970 = vmatpush.msrb.mxu2 %v941_v47  ;;  %v2816_v53 = vsel %vm2597_vm4, %v1308_v59, 0.0  ;;  %v2820_v27 = vsel %vm2601_vm5, %v1306_v45, 0.0 }
 0x1cc   : > { %1817 = vmatmul.msk.f32.vlgmr.msrb.gmra.mxu2 %vm640_vm0, %v947_v42  ;;  %993 = vmatpush.msrb.mxu3 %v942_v52  ;;  %v1389_v37 = vpop.permute.xlu2 %1388 }
 0x1cd   : > { %1819 = vmatmul.msk.f32.vlgmr.msrb.gmra.mxu3 %vm640_vm0, %v947_v42  ;;  %v1396_v59 = vmul.f32 %v1389_v37, %v2416_v7 }
 0x1d1   : > { %v1316_v36 = vpop.permute.xlu1 %1315  ;;  %v1302_v61 = vpop.permute.xlu0 %1301 }
 0x1d2   : > { %v1322_v31 = vsel %vm730_vm1, %v1316_v36, %v1320_v13  ;;  %v1324_v16 = vsel %vm730_vm1, %v1320_v13, %v1316_v36  ;;  %v1307_v13 = vsel %vm709_vm2, %v1302_v61, %v2764_v20  ;;  %v1305_v47 = vsel %vm709_vm2, %v2764_v20, %v1302_v61 }
 0x1d3   : > { %v2832_v55 = vsel %vm2593_vm3, %v1322_v31, 0.0  ;;  %v2836_v63 = vsel %vm2605_vm6, %v1324_v16, 0.0  ;;  %v2848_v52 = vsel %vm2597_vm4, %v1307_v13, 0.0 }
 0x1d4   : > { %1818 = vmatmul.msk.f32.gmra.mxu2 %vm640_vm0, %v948_v8 }
 0x1d5   : > { %1820 = vmatmul.msk.f32.gmra.mxu3 %vm640_vm0, %v948_v8  ;;  %v1457_v48 = vpop.permute.xlu2 %1456 }
 0x1d9   : > { %v1381_v32 = vpop.permute.xlu0 %1380  ;;  %v1393_v12 = vpop.permute.xlu1 %1392 }
 0x1da   : > { %v1397_v17 = vmul.f32 %v1393_v12, %v2408_v4  ;;  %v1398_v24 = vmul.f32 %v1393_v12, %v2410_v5  ;;  %v1385_v28 = vmul.f32 %v1381_v32, %v2816_v53  ;;  %v1386_v34 = vmul.f32 %v1381_v32, %v2820_v27 }
 0x1db   : > { %v2852_v32 = vsel %vm2601_vm5, %v1305_v47, 0.0  ;;  %v1395_v12 = vmul.f32 %v1389_v37, %v2412_v6  ;;  %v1461_v47 = vmul.f32 %v1457_v48, %v2408_v4 }
 0x1dc   : > { %v1401_v56 = vadd.f32 %v1397_v17, %v1385_v28  ;;  %v1402_v30 = vadd.f32 %v1398_v24, %v1386_v34 }
 0x1de   : > { %v1441_v26 = vpop.permute.xlu2 %1440 }
 0x1e1   : > { %v1318_v15 = vpop.permute.xlu0 %1317 }
 0x1e2   : > { %v1377_v49 = vpop.permute.xlu1 %1376  ;;  %v1321_v61 = vsel %vm730_vm1, %v1314_v50, %v1318_v15  ;;  %v1323_v16 = vsel %vm730_vm1, %v1318_v15, %v1314_v50 }
 0x1e3   : > { %v1383_v45 = vmul.f32 %v1377_v49, %v2848_v52  ;;  %v1384_v20 = vmul.f32 %v1377_v49, %v2852_v32  ;;  %v2866_v17 = vsel %vm2593_vm3, %v1321_v61, 0.0  ;;  %v2870_v34 = vsel %vm2605_vm6, %v1323_v16, 0.0 }
 0x1e5   : > { %v1399_v24 = vadd.f32 %v1395_v12, %v1383_v45  ;;  %v1400_v28 = vadd.f32 %v1396_v59, %v1384_v20 }
 0x1e7   : > { %v1469_v31 = vpop.permute.xlu2 %1468 }
 0x1e8   : > { %v1475_v12 = vmul.f32 %v1469_v31, %v2866_v17 }
 0x1e9   : > { %v1409_v44 = vpop.permute.xlu0 %1408 }
 0x1ea   : > { %v1413_v46 = vmul.f32 %v1409_v44, %v2832_v55  ;;  %v1414_v38 = vmul.f32 %v1409_v44, %v2836_v63 }
 0x1eb   : > { %v1445_v42 = vpop.permute.xlu1 %1444 }
 0x1ec   : > { %v1417_v36 = vadd.f32 %v1413_v46, %v1401_v56  ;;  %v1418_v8 = vadd.f32 %v1414_v38, %v1402_v30  ;;  %v1447_v56 = vmul.f32 %v1441_v26, %v2848_v52  ;;  %v1449_v46 = vmul.f32 %v1445_v42, %v2816_v53 }
 0x1ed   : > { %v1450_v38 = vmul.f32 %v1445_v42, %v2820_v27 }
 0x1ee   : > { %1425 = vrot.lane.b32.xlu0 %v1418_v8, %s2212_s28  ;;  %1421 = vrot.lane.b32.xlu2 %v1417_v36, %s2212_s28  ;;  %v1462_v36 = vmul.f32 %v1457_v48, %v2410_v5  ;;  %v1465_v20 = vadd.f32 %v1461_v47, %v1449_v46 }
 0x1f0   : > { %v1349_v45 = vpop.permute.xlu2 %1348  ;;  %v1466_v61 = vadd.f32 %v1462_v36, %v1450_v38  ;;  %v1296_v38 = vld [vmem:[%s3193_s11 + $0x8] sm:$0xff] }
 0x1f2   : > { %v1453_v13 = vpop.permute.xlu0 %1452 }
 0x1f3   : > { %v1459_v50 = vmul.f32 %v1453_v13, %v2412_v6  ;;  %v1460_v48 = vmul.f32 %v1453_v13, %v2416_v7  ;;  %v1295_v13 = vld [vmem:[%s3193_s11] sm:$0xff] }
 0x1f4   : > { %v1405_v49 = vpop.permute.xlu1 %1404 }
 0x1f5   : > { %v1411_v44 = vmul.f32 %v1405_v49, %v2866_v17  ;;  %v1412_v37 = vmul.f32 %v1405_v49, %v2870_v34  ;;  %v1463_v8 = vadd.f32 %v1459_v50, %v1447_v56  ;;  %v1476_v56 = vmul.f32 %v1469_v31, %v2870_v34 }
 0x1f7   : > { %v1415_v15 = vadd.f32 %v1411_v44, %v1399_v24  ;;  %v1416_v30 = vadd.f32 %v1412_v37, %v1400_v28  ;;  %v1479_v16 = vadd.f32 %v1475_v12, %v1463_v8  ;;  %v1448_v28 = vmul.f32 %v1441_v26, %v2852_v32 }
 0x1f9   : > { %1419 = vrot.lane.b32.xlu1 %v1415_v15, %s2212_s28  ;;  %1423 = vrot.lane.b32.xlu2 %v1416_v30, %s2212_s28  ;;  %v1464_v37 = vadd.f32 %v1460_v48, %v1448_v28  ;;  %v1365_v50 = vpop.permute.xlu2 %1364  ;;  %v1353_v15 = vmul.f32 %v1349_v45, %v2408_v4  ;;  %v1354_v30 = vmul.f32 %v1349_v45, %v2410_v5 }
 0x1fa   : > { %v1369_v31 = vmul.f32 %v1365_v50, %v2832_v55  ;;  %v1370_v4 = vmul.f32 %v1365_v50, %v2836_v63 }
 0x1fb   : > { %v1480_v46 = vadd.f32 %v1476_v56, %v1464_v37  ;;  %v1024_v37 = vpop.f32.mrf.mxu0 }
 0x1fd   : > { %v1473_v59 = vpop.permute.xlu1 %1472 }
 0x1fe   : > { %v1477_v24 = vmul.f32 %v1473_v59, %v2832_v55  ;;  %v1478_v42 = vmul.f32 %v1473_v59, %v2836_v63 }
 0x200   : > { %v1481_v49 = vadd.f32 %v1477_v24, %v1465_v20  ;;  %v1482_v44 = vadd.f32 %v1478_v42, %v1466_v61  ;;  %v1332_v61 = vpop.permute.xlu0 %1331 }
 0x201   : > { %1483 = vrot.lane.b32.xlu2 %v1479_v16, %s2211_s20  ;;  %v1339_v55 = vmul.f32 %v1332_v61, %v2848_v52  ;;  %v1340_v63 = vmul.f32 %v1332_v61, %v2852_v32 }
 0x202   : > { %1489 = vrot.lane.b32.xlu1 %v1482_v44, %s2211_s20  ;;  %1485 = vrot.lane.b32.xlu0 %v1481_v49, %s2211_s20  ;;  %v1047_v44 = vpop.f32.mrf.mxu1 }
 0x206   : > { %v1337_v26 = vpop.permute.xlu1 %1336 }
 0x207   : > { %v1341_v47 = vmul.f32 %v1337_v26, %v2816_v53  ;;  %v1342_v36 = vmul.f32 %v1337_v26, %v2820_v27 }
 0x209   : > { %v1357_v8 = vadd.f32 %v1353_v15, %v1341_v47  ;;  %v1358_v5 = vadd.f32 %v1354_v30, %v1342_v36  ;;  %1505 = vperm.xlu2 %1990, %v1295_v13  }
 0x20a   : > { %1510 = vperm.xlu1 %1989, %v1296_v38   ;;  %1487 = vrot.lane.b32.xlu0 %v1480_v46, %s2211_s20  ;;  %v1050_v32 = vpop.f32.mrf.mxu1  ;;  %v1027_v46 = vpop.f32.mrf.mxu0 }
 0x20b   : > { %v2904_v12 = vadd.f32 %v1369_v31, %v1357_v8  ;;  %v2906_v45 = vadd.f32 %v1370_v4, %v1358_v5 }
 0x20f   : > { %v1345_v20 = vpop.permute.xlu1 %1344 }
 0x210   : > { %v1351_v53 = vmul.f32 %v1345_v20, %v2412_v6  ;;  %v1352_v27 = vmul.f32 %v1345_v20, %v2416_v7 }
 0x211   : > { %1993 = vset.pattern.permute.xlu2 %v3260_v0 }
 0x212   : > { %1992 = vset.pattern.permute.xlu1 %v3258_v57  ;;  %v1355_v59 = vadd.f32 %v1351_v53, %v1339_v55  ;;  %v1356_v16 = vadd.f32 %v1352_v27, %v1340_v63 }
 0x218   : > { %v1361_v24 = vpop.permute.xlu1 %1360 }
 0x219   : > { %v1367_v42 = vmul.f32 %v1361_v24, %v2866_v17  ;;  %v1368_v28 = vmul.f32 %v1361_v24, %v2870_v34 }
 0x21b   : > { %v1371_v48 = vadd.f32 %v1367_v42, %v1355_v59  ;;  %v1372_v49 = vadd.f32 %v1368_v28, %v1356_v16 }
 0x248   : > { %v1422_v26 = vpop.permute.xlu2 %1421 }
 0x24f   : > { %v972_v57 = vpop.f32.mrf.mxu2 }
 0x250   : > { %v1025_v56 = vadd.f32 %v1024_v37, %v972_v57  ;;  %v995_v6 = vpop.f32.mrf.mxu3 }
 0x251   : > { %v1048_v50 = vadd.f32 %v1047_v44, %v995_v6 }
 0x252   : > { %v2917_v7 = vadd.f32 %v2572_v3, %v1025_v56 }
 0x253   : > { %v2920_v52 = vadd.f32 %v2572_v3, %v1048_v50  ;;  %v1424_v47 = vpop.permute.xlu2 %1423 }
 0x254   : > { %1089 = vrot.lane.b32.xlu0 %v2917_v7, %s2209_s0 }
 0x255   : > { %1077 = vrot.lane.b32.xlu1 %v2920_v52, %s2210_s18  ;;  %1093 = vrot.lane.b32.xlu2 %v2920_v52, %s2209_s0 }
 0x257   : > { %v975_v30 = vpop.f32.mrf.mxu2 }
 0x258   : > { %v998_v17 = vpop.f32.mrf.mxu3  ;;  %v1028_v3 = vadd.f32 %v1027_v46, %v975_v30  ;;  %v1583_v30 = vld [vmem:[#allocation8] sm:$0xff] }
 0x259   : > { %v1051_v34 = vadd.f32 %v1050_v32, %v998_v17  ;;  %v1585_v32 = vld [vmem:[%s3197_s15] sm:$0xff] }
 0x25a   : > { %v2937_v13 = vadd.f32 %v2580_v11, %v1028_v3  ;;  %v1071_v17 = vld [vmem:[%s3191_s9] sm:$0xff]  ;;  %v1072_v3 = vld [vmem:[%s3191_s9 + $0x8] sm:$0xf] }
 0x25b   : > { %v2929_v15 = vadd.f32 %v2580_v11, %v1051_v34  ;;  %v1484_v31 = vpop.permute.xlu2 %1483  ;;  %v1517_v34 = vld [vmem:[#allocation7] sm:$0xff] }
 0x25d   : > { %1232 = vperm.xlu1 %1992, %v2473_v23   ;;  %1095 = vrot.lane.b32.xlu0 %v2929_v15, %s2209_s0  ;;  %v1130_v41 = vmul.f32 %v2734_v33, %v2929_v15 }
 0x25e   : > { %1073 = vrot.lane.b32.xlu2 %v2917_v7, %s2210_s18 }
 0x260   : > { %v1426_v36 = vpop.permute.xlu0 %1425 }
 0x261   : > { %v1430_v11 = vsel %vm841_vm7, %v1426_v36, %v1422_v26 }
 0x265   : > { %1091 = vrot.lane.b32.xlu1 %v2937_v13, %s2209_s0  ;;  %1075 = vrot.lane.b32.xlu0 %v2937_v13, %s2210_s18  ;;  %s1842_s0 = smul.u32 48, %s2320_s25 }
 0x266   : > { %1079 = vrot.lane.b32.xlu2 %v2929_v15, %s2210_s18  ;;  %1994 = vset.pattern.permute.xlu1 %v3260_v0  ;;  %v1433_v0 = vsel %vm622_vm8, %v1430_v11, 0.0 }
 0x267   : > { %v1437_v53 = vadd.f32 %v1433_v0, %v2904_v12  ;;  %v1127_v0 = vmul.f32 %v2578_v10, %v2917_v7  ;;  %s1692_s25 = scalar_lea.hbm %s3264_s29, %s1842_s0 }
 0x268   : > { %s1695_s8 = sshll.u32 %s1692_s25, 4  ;;  %s1696_s8 = int_to_ptr.hbm [resolvable:$true] %s1695_s8 }
 0x269   : > { %s2132_s16 = sshra.s32 %s1696_s8, 4  ;;  %s2133_s16 = int_to_ptr.hbm [resolvable:$true] %s2132_s16 }
 0x26a   : > { %s2134_s21 = scalar_lea.hbm %s2133_s16, 48  ;;  %p2139_p3 = scmp.lt.s32.totalorder %s2133_s16, %s3264_s29 }
 0x26b   : > { %v1420_v38 = vpop.permute.xlu1 %1419  ;;  %p2135_p0 = scmp.ne.s32.totalorder %s2133_s16, %s2134_s21 }
 0x26c   : > { %v1427_v55 = vsel %vm841_vm7, %v1420_v38, %v1424_v47 }
 0x26d   : > { %1248 = vperm.xlu1 %1994, %v2473_v23   ;;  %1228 = vperm.xlu0 %1991, %v2455_v19   ;;  %v1428_v23 = vsel %vm841_vm7, %v1422_v26, %v1426_v36  ;;  %v1518_v26 = vld [vmem:[#allocation7 + $0x8] sm:$0xf]  ;;  %p2136_p1 = pnand %p2135_p0, %p2337_p5 }
 0x26e   : > { %1244 = vperm.xlu2 %1993, %v2455_v19   ;;  %v1429_v19 = vsel %vm841_vm7, %v1424_v47, %v1420_v38  ;;  %v1438_v27 = vadd.f32 %v1428_v23, %v2906_v45  ;;  %v1506_v45 = vpop.permute.xlu2 %1505 }
 0x26f   : > { %v1431_v63 = vsel %vm622_vm8, %v1429_v19, 0.0  ;;  %v1171_v19 = vmul.f32 %v2746_v18, %v2917_v7  ;;  %p2137_p2 = pneg %p2136_p1 }
 0x270   : > { %v1435_v24 = vadd.f32 %v1431_v63, %v1371_v48 }
 0x274   : > { %v1490_v4 = vpop.permute.xlu1 %1489  ;;  %v1486_v8 = vpop.permute.xlu0 %1485 }
 0x275   : > { %v1494_v5 = vsel %vm910_vm9, %v1490_v4, %v1486_v8  ;;  %1995 = vset.pattern.permute.xlu0 %v3255_v2  ;;  %1996 = vset.pattern.permute.xlu1 %v3255_v2  ;;  %v1492_v20 = vsel %vm910_vm9, %v1486_v8, %v1490_v4 }
 0x276   : > { %1997 = vset.pattern.permute.xlu2 %v3255_v2  ;;  %v1498_v61 = vsel %vm625_vm10, %v1494_v5, 0.0  ;;  %v1501_v59 = vadd.f32 %v1492_v20, %v1437_v53  ;;  %v1436_v2 = vadd.f32 %v1427_v55, %v1372_v49  ;;  %1281 = vperm.xlu0 %1995, %v1071_v17   ;;  %v1584_v20 = vld [vmem:[#allocation8 + $0x8] sm:$0xf]  ;;  %v1128_v55 = vmul.f32 %v2578_v10, %v2920_v52 }
 0x277   : > { %v1502_v16 = vadd.f32 %v1498_v61, %v1438_v27  ;;  %1589 = vperm.xlu2 %1997, %v1585_v32   ;;  %1286 = vperm.xlu1 %1996, %v1072_v3   ;;  %v1172_v27 = vmul.f32 %v2746_v18, %v2920_v52 }
 0x27c   : > { %v1511_v42 = vpop.permute.xlu1 %1510  ;;  %v1488_v28 = vpop.permute.xlu0 %1487 }
 0x27d   : > { %v1515_v44 = vadd.f32 %v1511_v42, %v1501_v59  ;;  %v1516_v37 = vadd.f32 %v1511_v42, %v1502_v16  ;;  %v1491_v57 = vsel %vm910_vm9, %v1484_v31, %v1488_v28  ;;  %v1493_v12 = vsel %vm910_vm9, %v1488_v28, %v1484_v31 }
 0x27e   : > { %v1496_v56 = vsel %vm625_vm10, %v1493_v12, 0.0  ;;  %v1499_v6 = vadd.f32 %v1491_v57, %v1435_v24 }
 0x27f   : > { %v1500_v50 = vadd.f32 %v1496_v56, %v1436_v2  ;;  %1551 = vmatpush.msra.mxu2 %v1515_v44  ;;  %1574 = vmatpush.msra.mxu3 %v1516_v37 }
 0x280   : > { %v1513_v48 = vadd.f32 %v1506_v45, %v1499_v6  ;;  %1617 = vmatpush.msra.mxu0 %v1515_v44  ;;  %1640 = vmatpush.msra.mxu1 %v1516_v37 }
 0x281   : > { %v1514_v49 = vadd.f32 %v1506_v45, %v1500_v50 }
 0x282   : > { %1552 = vmatpush.msra.mxu2 %v1513_v48  ;;  %1618 = vmatpush.msra.mxu0 %v1513_v48 }
 0x283   : > { %1575 = vmatpush.msra.mxu3 %v1514_v49  ;;  %1641 = vmatpush.msra.mxu1 %v1514_v49 }
 0x284   : > { %1825 = vmatmul.msk.f32.vlgmr.msra.gmra.mxu2 %vm640_vm0, %v1517_v34  ;;  %1827 = vmatmul.msk.f32.vlgmr.msra.gmra.mxu3 %vm640_vm0, %v1517_v34 }
 0x285   : > { %1829 = vmatmul.msk.f32.vlgmr.msra.gmra.mxu0 %vm640_vm0, %v1583_v30  ;;  %1831 = vmatmul.msk.f32.vlgmr.msra.gmra.mxu1 %vm640_vm0, %v1583_v30 }
 0x28c   : > { %1826 = vmatmul.msk.f32.gmra.mxu2 %vm640_vm0, %v1518_v26  ;;  %1828 = vmatmul.msk.f32.gmra.mxu3 %vm640_vm0, %v1518_v26  ;;  %v1129_v26 = vmul.f32 %v2734_v33, %v2937_v13 }
 0x28d   : > { %1830 = vmatmul.msk.f32.gmra.mxu0 %vm640_vm0, %v1584_v20  ;;  %1832 = vmatmul.msk.f32.gmra.mxu1 %vm640_vm0, %v1584_v20 }
 0x2af   : > { %v1094_v46 = vpop.permute.xlu2 %1093 }
 0x2b8   : > { %v1074_v47 = vpop.permute.xlu2 %1073 }
 0x2c6   : > { %v1090_v38 = vpop.permute.xlu0 %1089 }
 0x2c7   : > { %v1097_v36 = vsel %vm730_vm1, %v1090_v38, %v1094_v46  ;;  %v1099_v11 = vsel %vm730_vm1, %v1094_v46, %v1090_v38  ;;  %v1078_v31 = vpop.permute.xlu1 %1077  ;;  %v1174_v38 = vmul.f32 %v2730_v58, %v2929_v15 }
 0x2c8   : > { %v1081_v4 = vsel %vm709_vm2, %v1074_v47, %v1078_v31  ;;  %v1083_v8 = vsel %vm709_vm2, %v1078_v31, %v1074_v47  ;;  %v3003_v5 = vsel %vm2593_vm3, %v1097_v36, 0.0  ;;  %v3007_v23 = vsel %vm2605_vm6, %v1099_v11, 0.0 }
 0x2c9   : > { %v1085_v61 = vsel %vm2597_vm4, %v1083_v8, 0.0  ;;  %v1086_v53 = vsel %vm2601_vm5, %v1081_v4, 0.0  ;;  %v1143_v2 = vmul.f32 %v2718_v62, %v3003_v5  ;;  %v1144_v18 = vmul.f32 %v2718_v62, %v3007_v23  ;;  %v1080_v62 = vpop.permute.xlu2 %1079 }
 0x2ca   : > { %v1115_v63 = vmul.f32 %v2584_v25, %v1085_v61  ;;  %v1116_v59 = vmul.f32 %v2584_v25, %v1086_v53  ;;  %v1159_v16 = vmul.f32 %v2725_v54, %v1085_v61  ;;  %v1160_v24 = vmul.f32 %v2725_v54, %v1086_v53 }
 0x2cb   : > { %v1187_v42 = vmul.f32 %v2750_v22, %v3003_v5  ;;  %v1188_v10 = vmul.f32 %v2750_v22, %v3007_v23  ;;  %v1224_v33 = vmul.f32 %v2795_v60, %v1086_v53 }
 0x2cc   : > { %v1131_v28 = vadd.f32 %v1127_v0, %v1115_v63  ;;  %v1176_v44 = vadd.f32 %v1172_v27, %v1160_v24  ;;  %v1175_v37 = vadd.f32 %v1171_v19, %v1159_v16  ;;  %v1132_v25 = vadd.f32 %v1128_v55, %v1116_v59 }
 0x2cd   : > { %v1223_v55 = vmul.f32 %v2795_v60, %v1085_v61 }
 0x2ce   : > { %v1192_v45 = vadd.f32 %v1188_v10, %v1176_v44  ;;  %v1191_v54 = vadd.f32 %v1187_v42, %v1175_v37  ;;  %v3035_v56 = vadd.f32 %v1143_v2, %v1131_v28  ;;  %v3037_v6 = vadd.f32 %v1144_v18, %v1132_v25 }
 0x2cf   : > { %v1233_v57 = vpop.permute.xlu1 %1232  ;;  %v1096_v12 = vpop.permute.xlu0 %1095 }
 0x2d0   : > { %1199 = vrot.lane.b32.xlu2 %v1192_v45, %s2212_s28  ;;  %1195 = vrot.lane.b32.xlu0 %v1191_v54, %s2212_s28  ;;  %v1237_v10 = vmul.f32 %v1233_v57, %v2937_v13  ;;  %v1238_v25 = vmul.f32 %v1233_v57, %v2929_v15  ;;  %v1519_v57 = vld [vmem:[%s3263_s13] sm:$0xff] }
 0x2d1   : > { %v1245_v0 = vpop.permute.xlu2 %1244 }
 0x2d2   : > { %v1251_v24 = vmul.f32 %v1245_v0, %v3003_v5  ;;  %v1252_v2 = vmul.f32 %v1245_v0, %v3007_v23  ;;  %v1173_v5 = vmul.f32 %v2730_v58, %v2937_v13  ;;  %v1520_v58 = vld [vmem:[%s3263_s13 + $0x8] sm:$0xf] }
 0x2d7   : > { %v1092_v50 = vpop.permute.xlu1 %1091  ;;  %v1076_v48 = vpop.permute.xlu0 %1075 }
 0x2d8   : > { %v1098_v22 = vsel %vm730_vm1, %v1092_v50, %v1096_v12  ;;  %v1100_v49 = vsel %vm730_vm1, %v1096_v12, %v1092_v50  ;;  %v1082_v32 = vsel %vm709_vm2, %v1076_v48, %v1080_v62  ;;  %v1084_v17 = vsel %vm709_vm2, %v1080_v62, %v1076_v48 }
 0x2d9   : > { %v1103_v34 = vsel %vm2593_vm3, %v1098_v22, 0.0  ;;  %v1104_v30 = vsel %vm2605_vm6, %v1100_v49, 0.0  ;;  %v1087_v46 = vsel %vm2597_vm4, %v1084_v17, 0.0  ;;  %v1088_v3 = vsel %vm2601_vm5, %v1082_v32, 0.0  ;;  %v1590_v50 = vpop.permute.xlu2 %1589 }
 0x2da   : > { %v1117_v47 = vmul.f32 %v2576_v9, %v1087_v46  ;;  %v1118_v35 = vmul.f32 %v2576_v9, %v1088_v3  ;;  %v1162_v36 = vmul.f32 %v2752_v43, %v1088_v3  ;;  %v1145_v39 = vmul.f32 %v2741_v14, %v1103_v34 }
 0x2db   : > { %v1146_v40 = vmul.f32 %v2741_v14, %v1104_v30  ;;  %v1190_v11 = vmul.f32 %v2737_v1, %v1104_v30  ;;  %v1225_v16 = vmul.f32 %v2755_v51, %v1087_v46  ;;  %v1161_v60 = vmul.f32 %v2752_v43, %v1087_v46 }
 0x2dc   : > { %v1133_v31 = vadd.f32 %v1129_v26, %v1117_v47  ;;  %v1178_v4 = vadd.f32 %v1174_v38, %v1162_v36  ;;  %v1134_v8 = vadd.f32 %v1130_v41, %v1118_v35  ;;  %v1226_v37 = vmul.f32 %v2755_v51, %v1088_v3 }
 0x2dd   : > { %v1241_v44 = vadd.f32 %v1237_v10, %v1225_v16  ;;  %v1177_v45 = vadd.f32 %v1173_v5, %v1161_v60  ;;  %v1189_v43 = vmul.f32 %v2737_v1, %v1103_v34  ;;  %v1586_v1 = vld [vmem:[%s3197_s15 + $0x8] sm:$0xf] }
 0x2de   : > { %v1194_v20 = vadd.f32 %v1190_v11, %v1178_v4  ;;  %v3069_v27 = vadd.f32 %v1146_v40, %v1134_v8  ;;  %v3071_v9 = vadd.f32 %v1145_v39, %v1133_v31  ;;  %v1242_v54 = vadd.f32 %v1238_v25, %v1226_v37 }
 0x2df   : > { %v1229_v19 = vpop.permute.xlu0 %1228  ;;  %v1249_v63 = vpop.permute.xlu1 %1248  ;;  %v1193_v51 = vadd.f32 %v1189_v43, %v1177_v45 }
 0x2e0   : > { %v1235_v59 = vmul.f32 %v1229_v19, %v2917_v7  ;;  %v1236_v14 = vmul.f32 %v1229_v19, %v2920_v52  ;;  %1201 = vrot.lane.b32.xlu0 %v1194_v20, %s2212_s28  ;;  %v1253_v61 = vmul.f32 %v1249_v63, %v1103_v34  ;;  %v1254_v12 = vmul.f32 %v1249_v63, %v1104_v30 }
 0x2e2   : > { %v1239_v18 = vadd.f32 %v1235_v59, %v1223_v55  ;;  %v1240_v42 = vadd.f32 %v1236_v14, %v1224_v33  ;;  %v1257_v23 = vadd.f32 %v1253_v61, %v1241_v44  ;;  %v1258_v62 = vadd.f32 %v1254_v12, %v1242_v54 }
 0x2e4   : > { %v1256_v53 = vadd.f32 %v1252_v2, %v1240_v42  ;;  %v1255_v28 = vadd.f32 %v1251_v24, %v1239_v18 }
 0x2e6   : > { %1263 = vrot.lane.b32.xlu1 %v1256_v53, %s2211_s20  ;;  %1259 = vrot.lane.b32.xlu2 %v1255_v28, %s2211_s20 }
 0x2e8   : > { %1261 = vrot.lane.b32.xlu0 %v1257_v23, %s2211_s20  ;;  %v1282_v49 = vpop.permute.xlu0 %1281 }
 0x2e9   : > { %v1287_v34 = vpop.permute.xlu1 %1286 }
 0x2ee   : > { %1265 = vrot.lane.b32.xlu2 %v1258_v62, %s2211_s20  ;;  %1197 = vrot.lane.b32.xlu1 %v1193_v51, %s2212_s28  ;;  %s579_s20 = sand.u32 1, %s2184_s22  }
 0x2ef   : > { %s1841_s30 = smul.u32 48, %s579_s20  ;;  %s1681_s6 = scalar_lea.sflag [#allocation4], %s579_s20 }
 0x2f0   : > { %1528 = vperm.xlu0 %1995, %v1520_v58  }
 0x2f1   : > { %s3111_s26 = scalar_lea.vmem [#allocation10], %s1841_s30  ;;  %s2138_s30 = scalar_lea.hbm %s3264_s29, 96 }
 0x2f2   : > { %s1693_s27 = sshll.u32 %s3111_s26, 4  ;;  %p2140_p4 = scmp.lt.s32.totalorder %s2138_s30, %s2134_s21  ;;  %s1694_s27 = int_to_ptr.vmem [resolvable:$true] %s1693_s27 }
 0x2f4   : > { %p2141_p7 = por %p2140_p4, %p2139_p3 }
 0x2f6   : > { %1523 = vperm.xlu2 %1997, %v1519_v57   ;;  %1594 = vperm.xlu1 %1996, %v1586_v1   ;;  %p2142_p8 = pnand %p2141_p7, %p2137_p2 }
 0x302   : > { %v1620_v4 = vpop.f32.mrf.mxu0  ;;  %v1643_v0 = vpop.f32.mrf.mxu1 }
 0x303   : > { %v1621_v63 = vadd.f32 %v1620_v4, %v1590_v50  ;;  %v1644_v59 = vadd.f32 %v1643_v0, %v1590_v50 }
 0x307   : > { %v1554_v30 = vpop.f32.mrf.mxu2  ;;  %v1577_v46 = vpop.f32.mrf.mxu3 }
 0x30a   : > { %v1623_v51 = vpop.f32.mrf.mxu0  ;;  %v1646_v58 = vpop.f32.mrf.mxu1 }
 0x30f   : > { %v1557_v60 = vpop.f32.mrf.mxu2  ;;  %v1580_v53 = vpop.f32.mrf.mxu3 }
 0x32a   : > { %v1200_v48 = vpop.permute.xlu2 %1199 }
 0x340   : > { %v1260_v22 = vpop.permute.xlu2 %1259 }
 0x342   : > { %v1196_v17 = vpop.permute.xlu0 %1195 }
 0x343   : > { %v1205_v47 = vsel %vm841_vm7, %v1200_v48, %v1196_v17  ;;  %v1203_v40 = vsel %vm841_vm7, %v1196_v17, %v1200_v48 }
 0x344   : > { %v1207_v39 = vsel %vm622_vm8, %v1205_v47, 0.0 }
 0x345   : > { %v1211_v11 = vadd.f32 %v1207_v39, %v3035_v56 }
 0x348   : > { %v1266_v32 = vpop.permute.xlu2 %1265 }
 0x350   : > { %v1524_v3 = vpop.permute.xlu2 %1523 }
 0x351   : > { %v1555_v26 = vadd.f32 %v1554_v30, %v1524_v3  ;;  %v1578_v38 = vadd.f32 %v1577_v46, %v1524_v3 }
 0x352   : > { %v1202_v41 = vpop.permute.xlu0 %1201 }
 0x353   : > { %v1649_v35 = vadd.f32 %v1555_v26, %v2917_v7  ;;  %v1650_v36 = vadd.f32 %v1578_v38, %v2920_v52  ;;  %v1212_v7 = vadd.f32 %v1203_v40, %v3037_v6 }
 0x355   : > { %1653 = vst [vmem:[%s3111_s26] sm:$0xff] %v1649_v35 }
 0x356   : > { %1654 = vst [vmem:[%s3111_s26 + $0x8] sm:$0xff] %v1650_v36 }
 0x358   : > { %v1264_v31 = vpop.permute.xlu1 %1263 }
 0x359   : > { %v1267_v52 = vsel %vm910_vm9, %v1260_v22, %v1264_v31  ;;  %v1269_v8 = vsel %vm910_vm9, %v1264_v31, %v1260_v22 }
 0x35a   : > { %v1272_v19 = vsel %vm625_vm10, %v1269_v8, 0.0  ;;  %v1275_v20 = vadd.f32 %v1267_v52, %v1211_v11  ;;  %v1262_v33 = vpop.permute.xlu0 %1261 }
 0x35b   : > { %v1276_v55 = vadd.f32 %v1272_v19, %v1212_v7  ;;  %v1270_v42 = vsel %vm910_vm9, %v1266_v32, %v1262_v33  ;;  %v1268_v23 = vsel %vm910_vm9, %v1262_v33, %v1266_v32 }
 0x35c   : > { %v1289_v56 = vadd.f32 %v1282_v49, %v1275_v20  ;;  %v1274_v25 = vsel %vm625_vm10, %v1270_v42, 0.0 }
 0x35d   : > { %v1290_v6 = vadd.f32 %v1282_v49, %v1276_v55 }
 0x35e   : > { %v1657_v14 = vadd.f32 %v1621_v63, %v1289_v56 }
 0x35f   : > { %v1658_v16 = vadd.f32 %v1644_v59, %v1290_v6 }
 0x360   : > { %v1666_v24 = vrot.slane %v1657_v14, 4  ;;  %v1198_v2 = vpop.permute.xlu1 %1197 }
 0x361   : > { %v1667_v18 = vrot.slane %v1658_v16, 4  ;;  %v1204_v10 = vsel %vm841_vm7, %v1198_v2, %v1202_v41  ;;  %v1206_v61 = vsel %vm841_vm7, %v1202_v41, %v1198_v2 }
 0x362   : > { %1676 = vst [vmem:[%s3111_s26 + $0x10] sm:$0xf0] %v1666_v24  ;;  %v1209_v28 = vsel %vm622_vm8, %v1206_v61, 0.0  ;;  %v1214_v44 = vadd.f32 %v1204_v10, %v3069_v27  ;;  %v1529_v5 = vpop.permute.xlu0 %1528 }
 0x363   : > { %1677 = vst [vmem:[%s3111_s26 + $0x18] sm:$0xf0] %v1667_v18  ;;  %v1213_v37 = vadd.f32 %v1209_v28, %v3071_v9  ;;  %v1558_v12 = vadd.f32 %v1557_v60, %v1529_v5  ;;  %v1581_v45 = vadd.f32 %v1580_v53, %v1529_v5 }
 0x364   : > { %v1278_v54 = vadd.f32 %v1274_v25, %v1214_v44 }
 0x365   : > { %v1277_v43 = vadd.f32 %v1268_v23, %v1213_v37  ;;  %v1651_v62 = vadd.f32 %v1558_v12, %v2937_v13  ;;  %v1652_v27 = vadd.f32 %v1581_v45, %v2929_v15 }
 0x366   : > { %v1292_v21 = vadd.f32 %v1287_v34, %v1278_v54 }
 0x367   : > { %1655 = vst [vmem:[%s3111_s26 + $0x10] sm:$0xf] %v1651_v62  ;;  %v1291_v57 = vadd.f32 %v1287_v34, %v1277_v43 }
 0x368   : > { %v1595_v9 = vpop.permute.xlu1 %1594  ;;  %1656 = vst [vmem:[%s3111_s26 + $0x18] sm:$0xf] %v1652_v27 }
 0x369   : > { %v1624_v29 = vadd.f32 %v1623_v51, %v1595_v9  ;;  %v1647_v1 = vadd.f32 %v1646_v58, %v1595_v9 }
 0x36b   : > { %v1659_v13 = vadd.f32 %v1624_v29, %v1291_v57  ;;  %v1660_v50 = vadd.f32 %v1647_v1, %v1292_v21 }
 0x36d   : > { %v1668_v15 = vrot.slane %v1659_v13, 4  ;;  %v1670_v48 = vrot.slane %v1660_v50, 4 }
 0x36f   : > { %v1669_v22 = vsel %vm1665_vm11, %v1666_v24, %v1668_v15  ;;  %v1671_v49 = vsel %vm1665_vm11, %v1667_v18, %v1670_v48 }
 0x370   : > { %1678 = vst [vmem:[%s3111_s26 + $0x20] sm:$0xff] %v1669_v22 }
 0x371   : > { %1679 = vst [vmem:[%s3111_s26 + $0x28] sm:$0xff] %v1671_v49 }
 0x372   : > { %2145 = shalt.err (!%p2142_p8)
}
 0x373   : > { %s2213_s20 = smov 256  }
 0x374   : > { %1859 = dma.vmem_to_hbm [thread:$0]  (%p2337_p5), %s1694_s27, 768, %s1696_s8, %s1681_s6, %s2213_s20, %s2213_s20, %s2212_s28  }
 0x375 PF: > { %s3266_s26 = sld [smem:[#allocation17_spill]] }
 0x376   : > { %s3267_s19 = sld [smem:[#allocation15_spill]] }
 0x37b   : > { %p1886_p9 = scmp.ge.s32.totalorder %s3266_s26, 2 }
 0x37c   : > { %s1710_s23 = sand.u32 1, %s3267_s19  }
 0x37d   : > { %p1875_p10 = pnand %p1886_p9, %p2341_p6  ;;  %s1711_s24 = scalar_lea.sflag [#allocation4], %s1710_s23 }
 0x37f   : > { %p1876_p11 = pneg %p1875_p10 }
 0x381   : > { %2175 = dma.done.wait (%p1876_p11), %s1711_s24, 768  }
 0x382   : > { %2177 = vsyncadd (%p1876_p11), %s1711_s24, 4294966528  ;;  %s3269_s24 = sld [smem:[#allocation18_spill]]  ;;  %s3272_s21 = smov %s2184_s22 }
 0x383   : > { %s3270_s16 = sld [smem:[#allocation16_spill]] }
 0x384   : > { %s3271_s23 = sld [smem:[#allocation19_spill]] }
 0x388   : > { %p29_p12 = scmp.ge.s32.totalorder %s3269_s24, 4  }
 0x389   : > { %s3273_s22 = smov %s3270_s16 }
 0x38a   :  { %31 = sbr.rel (!%p29_p12) target bundleno = 12 (0xc), region = 136 }
 0x38f   :  { %1717 = vsyncpa [#allocation3], 1 }
 0x390   :  { %1719 = vsyncpa [#allocation3 + $0x1], 1 }
 0x391   :  { %1720 = vsyncpa [#allocation6], 1 }
 0x392   :  { %1721 = vsyncpa [#allocation9], 1 }
 0x393   :  { %1722 = vsyncpa [#allocation4], 1 }
 0x394   :  { %1724 = vsyncpa [#allocation4 + $0x1], 1 }

</bundles_post_ra>
